<compile_context>
chip_gen: v7x
topology: tpu7x:2x2x1
jax: 0.10.0
libtpu: 0.0.40
codegen_flags: <defaults>
</compile_context>

<pallas_src>
import functools
import math

import jax
import jax.numpy as jnp
from jax.experimental import pallas as pl
from jax.experimental.pallas import tpu as pltpu


# ---------------------------------------------------------------------------
# Generation-aware sizing: query VMEM capacity once and leave ~20% headroom
# for compiler scratch (v7x: 64 MiB/TC, v5e/v6e: 128 MiB).
# ---------------------------------------------------------------------------
def _vmem_capacity_bytes():
    try:
        return int(pltpu.get_tpu_info().vmem_capacity_bytes)
    except Exception:
        return 64 * 1024 * 1024          # conservative fallback (fits v7x)


_VMEM_CAP = _vmem_capacity_bytes()
VMEM_LIMIT_BYTES = int(_VMEM_CAP * 0.8)
MAX_ROW_TILE = 512 if _VMEM_CAP >= 96 * 1024 * 1024 else 256   # v5e/v6e vs v7x


def _mosaic_params(*semantics):
    return pltpu.CompilerParams(dimension_semantics=tuple(semantics),
                                vmem_limit_bytes=VMEM_LIMIT_BYTES)


def _round_up(n, m):
    return ((n + m - 1) // m) * m


def _row_tile(n, max_tile):
    """Largest power-of-two tile (>=8, <=max_tile) dividing n, else n itself."""
    t = max_tile
    while t >= 8:
        if n % t == 0:
            return t
        t //= 2
    return n


def _token_tile(n):
    t = _row_tile(n, MAX_ROW_TILE)
    # keep >=2 grid steps when possible so both v7x TensorCores get work
    if n // t < 2 and t >= 16:
        t //= 2
    return t


def _resident(shape):
    """BlockSpec for a parameter block resident across the whole grid.

    Constant index_map => fetched once; pl.Buffered(1) disables the useless
    double-buffering so resident weights cost 1x (not 2x) VMEM.
    """
    index_map = lambda *_: (0,) * len(shape)
    try:
        return pl.BlockSpec(shape, index_map, pipeline_mode=pl.Buffered(1))
    except Exception:   # pipeline_mode unavailable -> default double-buffering
        return pl.BlockSpec(shape, index_map)


# ---------------------------------------------------------------------------
# Kernel 1: embedding sum (token + segment + positional), tiled over (B, S).
# Emits both the f32 residual stream and a bf16 copy for the QKV matmul.
# ---------------------------------------------------------------------------
def embed_add_kernel(tok_ref, seg_ref, pos_ref, o32_ref, o16_ref):
    x = tok_ref[...] + seg_ref[...] + pos_ref[...]
    o32_ref[...] = x
    o16_ref[...] = x.astype(jnp.bfloat16)


def embed_add(tok_e, seg_e, pos_e):
    B, S, H = tok_e.shape
    ts = _row_tile(S, 256)
    io_spec = pl.BlockSpec((1, ts, H), lambda b, s: (b, s, 0))
    pos_spec = pl.BlockSpec((1, ts, H), lambda b, s: (0, s, 0))   # batch-bcast
    return pl.pallas_call(
        embed_add_kernel,
        out_shape=(jax.ShapeDtypeStruct((B, S, H), jnp.float32),
                   jax.ShapeDtypeStruct((B, S, H), jnp.bfloat16)),
        grid=(B, S // ts),
        in_specs=[io_spec, io_spec, pos_spec],
        out_specs=(io_spec, io_spec),
        compiler_params=_mosaic_params("parallel", "parallel"),
    )(tok_e, seg_e, pos_e)


# ---------------------------------------------------------------------------
# Kernel 2: fused QKV projection, token-tiled; resident bf16 weight slab.
# Emits separate head-major (N, H) q/k/v slabs (bf16) for the MHA kernel.
# ---------------------------------------------------------------------------
def qkv_projection_kernel(x_ref, w_ref, b_ref, q_ref, k_ref, v_ref):
    acc = jnp.dot(x_ref[...], w_ref[...], preferred_element_type=jnp.float32)
    acc = (acc + b_ref[...]).astype(jnp.bfloat16)
    H = q_ref.shape[1]
    q_ref[...] = acc[:, :H]
    k_ref[...] = acc[:, H:2 * H]
    v_ref[...] = acc[:, 2 * H:3 * H]


def qkv_projection(x16, wqkv, bqkv):
    N, H = x16.shape
    tm = _token_tile(N)
    row = pl.BlockSpec((tm, H), lambda i: (i, 0))
    return pl.pallas_call(
        qkv_projection_kernel,
        out_shape=tuple(jax.ShapeDtypeStruct((N, H), jnp.bfloat16)
                        for _ in range(3)),
        grid=(N // tm,),
        in_specs=[pl.BlockSpec((tm, H), lambda i: (i, 0)),
                  _resident((H, 3 * H)),        # [Wq|Wk|Wv] slab, bf16
                  _resident((1, 3 * H))],       # bias
        out_specs=(row, row, row),
        compiler_params=_mosaic_params("parallel"),
    )(x16, wqkv, bqkv)


# ---------------------------------------------------------------------------
# Kernel 3: masked multi-head attention over (batch, head-group, query-tile).
# Column panels (head groups) are picked straight from the (N, H) q/k/v slabs
# and the context is written straight into an (N, H) slab -> no transposes.
# ---------------------------------------------------------------------------
def mha_kernel(vl_ref, q_ref, k_ref, v_ref, o_ref, *, heads_per_block, head_dim):
    b = pl.program_id(0)
    valid = vl_ref[b]
    tq = q_ref.shape[0]
    s = k_ref.shape[0]
    key_pos = jax.lax.broadcasted_iota(jnp.int32, (tq, s), 1)
    keep = key_pos < valid

    ctxs = []
    for h in range(heads_per_block):            # static unroll over grouped heads
        lo, hi = h * head_dim, (h + 1) * head_dim
        qh = q_ref[:, lo:hi]
        kh = k_ref[:, lo:hi]
        vh = v_ref[:, lo:hi]
        # scores = q @ k^T ; 1/sqrt(head_dim) already folded into Wq columns.
        scores = jax.lax.dot_general(qh, kh, (((1,), (1,)), ((), ())),
                                     preferred_element_type=jnp.float32)
        scores = jnp.where(keep, scores, jnp.float32(-1e6))
        m = jnp.max(scores, axis=-1, keepdims=True)
        e = jnp.exp(scores - m)
        p = e * pl.reciprocal(jnp.sum(e, axis=-1, keepdims=True), approx=True)
        ctxs.append(jnp.dot(p.astype(jnp.bfloat16), vh,
                            preferred_element_type=jnp.float32))
    ctx = ctxs[0] if len(ctxs) == 1 else jnp.concatenate(ctxs, axis=-1)
    o_ref[...] = ctx.astype(o_ref.dtype)        # one lane-dense block store


def multi_head_attention(q, k, v, valid_lens, B, S, num_heads):
    N, H = q.shape
    hd = H // num_heads
    # Group heads so each column panel is >=128 lanes wide (lane-dense blocks);
    # otherwise process all heads at once (panel == full H, still legal).
    hg = num_heads
    for g in range(1, num_heads + 1):
        if num_heads % g == 0 and (g * hd) % 128 == 0:
            hg = g
            break
    cw = hg * hd
    G = num_heads // hg
    tq = _row_tile(S, 256)
    nt = S // tq

    grid_spec = pltpu.PrefetchScalarGridSpec(
        num_scalar_prefetch=1,
        grid=(B, G, nt),
        in_specs=[
            pl.BlockSpec((tq, cw), lambda b, g, t, vl: (b * nt + t, g)),  # Q
            pl.BlockSpec((S, cw), lambda b, g, t, vl: (b, g)),            # K
            pl.BlockSpec((S, cw), lambda b, g, t, vl: (b, g)),            # V
        ],
        out_specs=pl.BlockSpec((tq, cw), lambda b, g, t, vl: (b * nt + t, g)),
    )
    kernel = functools.partial(mha_kernel, heads_per_block=hg, head_dim=hd)
    return pl.pallas_call(
        kernel,
        grid_spec=grid_spec,
        out_shape=jax.ShapeDtypeStruct((N, H), jnp.bfloat16),
        compiler_params=_mosaic_params("parallel", "parallel", "parallel"),
    )(valid_lens, q, k, v)


# ---------------------------------------------------------------------------
# Kernel 4: output projection + AddNorm1 + FFN (tiled over its hidden dim F)
# + AddNorm2, token-tiled.  Emits f32 residual stream + bf16 copy.
# ---------------------------------------------------------------------------
def _layernorm(x, gamma, beta, eps=1e-5):
    mu = jnp.mean(x, axis=-1, keepdims=True)
    var = jnp.mean((x - mu) * (x - mu), axis=-1, keepdims=True)
    return (x - mu) * jax.lax.rsqrt(var + eps) * gamma + beta


def post_attention_kernel(ctx_ref, x_ref, wo_ref, bo_ref, g1_ref, be1_ref,
                          w1_ref, b1_ref, w2_ref, b2_ref, g2_ref, be2_ref,
                          o32_ref, o16_ref, y_ref, acc_ref):
    f = pl.program_id(1)

    @pl.when(f == 0)
    def _():
        attn = jnp.dot(ctx_ref[...], wo_ref[...],
                       preferred_element_type=jnp.float32) + bo_ref[...]
        y_ref[...] = _layernorm(x_ref[...] + attn, g1_ref[...], be1_ref[...])
        acc_ref[...] = jnp.zeros_like(acc_ref)

    # FFN panel over the F axis: dense1 column panel + ReLU, dense2 row panel.
    h = jnp.dot(y_ref[...].astype(jnp.bfloat16), w1_ref[...],
                preferred_element_type=jnp.float32) + b1_ref[...]
    h = jnp.maximum(h, 0.0)
    acc_ref[...] += jnp.dot(h.astype(jnp.bfloat16), w2_ref[...],
                            preferred_element_type=jnp.float32)

    @pl.when(f == pl.num_programs(1) - 1)
    def _():
        out = _layernorm(y_ref[...] + acc_ref[...] + b2_ref[...],
                         g2_ref[...], be2_ref[...])
        o32_ref[...] = out
        o16_ref[...] = out.astype(jnp.bfloat16)


def _ffn_tile(F):
    if F % 128 == 0:
        tf = 128
        while tf * 2 <= min(F, 512) and F % (tf * 2) == 0:
            tf *= 2
        return tf
    return F            # small / odd F: keep whole FFN hidden dim per step


def post_attention(ctx, x32, p):
    N, H = x32.shape
    F = p["w1"].shape[1]
    tm = _token_tile(N)
    tf = _ffn_tile(F)
    row = pl.BlockSpec((tm, H), lambda i, f: (i, 0))
    return pl.pallas_call(
        post_attention_kernel,
        out_shape=(jax.ShapeDtypeStruct((N, H), jnp.float32),
                   jax.ShapeDtypeStruct((N, H), jnp.bfloat16)),
        grid=(N // tm, F // tf),
        in_specs=[
            row,                                         # ctx (bf16)
            row,                                         # x residual (f32)
            _resident((H, H)), _resident((1, H)),        # Wo, bo
            _resident((1, H)), _resident((1, H)),        # gamma1, beta1
            pl.BlockSpec((H, tf), lambda i, f: (0, f)),  # W1 column panel
            pl.BlockSpec((1, tf), lambda i, f: (0, f)),  # b1 panel
            pl.BlockSpec((tf, H), lambda i, f: (f, 0)),  # W2 row panel
            _resident((1, H)),                           # b2
            _resident((1, H)), _resident((1, H)),        # gamma2, beta2
        ],
        out_specs=(row, row),
        scratch_shapes=[pltpu.VMEM((tm, H), jnp.float32),   # y  (AddNorm1 out)
                        pltpu.VMEM((tm, H), jnp.float32)],  # FFN accumulator
        compiler_params=_mosaic_params("parallel", "arbitrary"),
    )(ctx, x32, p["wo"], p["bo"], p["g1"], p["be1"],
      p["w1"], p["b1"], p["w2"], p["b2"], p["g2"], p["be2"])


# ---------------------------------------------------------------------------
# Encoder block / full forward.
# ---------------------------------------------------------------------------
def transformer_encoder_block(x32, x16, valid_lens, p, B, S, num_heads):
    q, k, v = qkv_projection(x16, p["wqkv"], p["bqkv"])            # (N, H) bf16 x3
    ctx = multi_head_attention(q, k, v, valid_lens, B, S, num_heads)  # (N, H) bf16
    return post_attention(ctx, x32, p)                             # f32, bf16


def bert_encoder_forward(params, tokens, segments, valid_lens, num_heads):
    B, S0 = tokens.shape
    H = params["token_embedding"].shape[1]
    valid_lens = valid_lens.astype(jnp.int32)
    # Pad the sequence to a sublane multiple so every tile stays aligned.
    # Padded key positions are masked via valid_lens; padded query rows are
    # sliced off at the end (their values never feed real rows).
    S = max(_round_up(S0, 8), 8)
    assert params["pos_embedding"].shape[1] >= S
    if S != S0:
        tokens = jnp.pad(tokens, ((0, 0), (0, S - S0)))
        segments = jnp.pad(segments, ((0, 0), (0, S - S0)))
    # Embedding gathers are glue (XLA); all adds/matmuls/softmax/LayerNorm/FFN
    # compute runs inside Pallas kernels.
    tok_e = jnp.take(params["token_embedding"], tokens, axis=0)      # (B, S, H)
    seg_e = jnp.take(params["segment_embedding"], segments, axis=0)  # (B, S, H)
    pos_e = params["pos_embedding"][:, :S, :]                        # (1, S, H)
    x32, x16 = embed_add(tok_e, seg_e, pos_e)
    N = B * S
    x32 = x32.reshape(N, H)
    x16 = x16.reshape(N, H)
    for blk in params["blocks"]:
        x32, x16 = transformer_encoder_block(x32, x16, valid_lens, blk,
                                             B, S, num_heads)
    out = x32.reshape(B, S, H)
    return out[:, :S0, :] if S != S0 else out


# ---------------------------------------------------------------------------
# Parameter init (weights bf16 in HBM; biases / norm params / embeddings f32).
# ---------------------------------------------------------------------------
def init_params(key, vocab_size, num_hiddens, ffn_num_hiddens, num_heads,
                num_blks, max_len):
    H, F = num_hiddens, ffn_num_hiddens
    att_scale = 1.0 / math.sqrt(H // num_heads)
    keys = jax.random.split(key, 3 + num_blks)
    params = {
        "token_embedding": 0.02 * jax.random.normal(keys[0], (vocab_size, H), jnp.float32),
        "segment_embedding": 0.02 * jax.random.normal(keys[1], (2, H), jnp.float32),
        "pos_embedding": 0.02 * jax.random.normal(keys[2], (1, max_len, H), jnp.float32),
        "blocks": [],
    }
    for i in range(num_blks):
        ks = jax.random.split(keys[3 + i], 6)
        s = 1.0 / math.sqrt(H)
        sf = 1.0 / math.sqrt(F)
        # 1/sqrt(head_dim) folded into the Q weight columns (Q bias is zero),
        # so the MHA kernel never multiplies the scores by the scale.
        wq = (s * jax.random.normal(ks[0], (H, H), jnp.float32)) * att_scale
        wk = s * jax.random.normal(ks[1], (H, H), jnp.float32)
        wv = s * jax.random.normal(ks[2], (H, H), jnp.float32)
        blk = {
            # fused head-major [Wq | Wk | Wv] slab, bf16 (lane-dense 3H output)
            "wqkv": jnp.concatenate([wq, wk, wv], axis=1).astype(jnp.bfloat16),
            "bqkv": jnp.zeros((1, 3 * H), jnp.float32),
            "wo": (s * jax.random.normal(ks[3], (H, H), jnp.float32)).astype(jnp.bfloat16),
            "bo": jnp.zeros((1, H), jnp.float32),
            "g1": jnp.ones((1, H), jnp.float32),
            "be1": jnp.zeros((1, H), jnp.float32),
            "w1": (s * jax.random.normal(ks[4], (H, F), jnp.float32)).astype(jnp.bfloat16),
            "b1": jnp.zeros((1, F), jnp.float32),
            "w2": (sf * jax.random.normal(ks[5], (F, H), jnp.float32)).astype(jnp.bfloat16),
            "b2": jnp.zeros((1, H), jnp.float32),
            "g2": jnp.ones((1, H), jnp.float32),
            "be2": jnp.zeros((1, H), jnp.float32),
        }
        params["blocks"].append(blk)
    return params


if __name__ == "__main__":
    vocab_size = 100
    num_hiddens = 32
    ffn_num_hiddens = 64
    num_heads = 2
    num_blks = 2
    max_len = 64
    batch, seq = 2, 8

    key = jax.random.PRNGKey(0)
    pkey, tkey, skey = jax.random.split(key, 3)
    params = init_params(pkey, vocab_size, num_hiddens, ffn_num_hiddens,
                         num_heads, num_blks, max_len)

    tokens = jax.random.randint(tkey, (batch, seq), 0, vocab_size, dtype=jnp.int32)
    segments = jax.random.randint(skey, (batch, seq), 0, 2, dtype=jnp.int32)
    valid_lens = jnp.array([seq, seq - 3], dtype=jnp.int32)

    fwd = jax.jit(functools.partial(bert_encoder_forward, num_heads=num_heads))
    out = fwd(params, tokens, segments, valid_lens)
    out = jax.block_until_ready(out)
    assert out.shape == (batch, seq, num_hiddens)
    assert bool(jnp.all(jnp.isfinite(out)))
    print("KERNEL_OK")
</pallas_src>

<mosaic_0001>
module attributes {stable_mosaic.version = 11 : i64} {
  func.func @embed_add_kernel(%arg0: i32, %arg1: i32, %arg2: memref<1x8x32xf32, #tpu.memory_space<vmem>>, %arg3: memref<1x8x32xf32, #tpu.memory_space<vmem>>, %arg4: memref<1x8x32xf32, #tpu.memory_space<vmem>>, %arg5: memref<1x8x32xf32, #tpu.memory_space<vmem>>, %arg6: memref<1x8x32xbf16, #tpu.memory_space<vmem>>) attributes {dimension_semantics = [#tpu.dimension_semantics<parallel>, #tpu.dimension_semantics<parallel>], iteration_bounds = array<i64: 2, 1>, scalar_prefetch = 0 : i64, scratch_operands = 0 : i64, tpu.core_type = #tpu.core_type<tc>, window_params = [{transform_indices = @transform_0, window_bounds = array<i64: 1, 8, 32>}, {transform_indices = @transform_1, window_bounds = array<i64: 1, 8, 32>}, {transform_indices = @transform_2, window_bounds = array<i64: 1, 8, 32>}, {transform_indices = @transform_3, window_bounds = array<i64: 1, 8, 32>}, {transform_indices = @transform_4, window_bounds = array<i64: 1, 8, 32>}]} {
    %c0 = arith.constant 0 : index
    %c0_0 = arith.constant 0 : index
    %c0_1 = arith.constant 0 : index
    %0 = vector.load %arg2[%c0, %c0_0, %c0_1] : memref<1x8x32xf32, #tpu.memory_space<vmem>>, vector<1x8x32xf32>
    %c0_2 = arith.constant 0 : index
    %c0_3 = arith.constant 0 : index
    %c0_4 = arith.constant 0 : index
    %1 = vector.load %arg3[%c0_2, %c0_3, %c0_4] : memref<1x8x32xf32, #tpu.memory_space<vmem>>, vector<1x8x32xf32>
    %2 = arith.addf %0, %1 : vector<1x8x32xf32>
    %c0_5 = arith.constant 0 : index
    %c0_6 = arith.constant 0 : index
    %c0_7 = arith.constant 0 : index
    %3 = vector.load %arg4[%c0_5, %c0_6, %c0_7] : memref<1x8x32xf32, #tpu.memory_space<vmem>>, vector<1x8x32xf32>
    %4 = arith.addf %2, %3 : vector<1x8x32xf32>
    %c0_8 = arith.constant 0 : index
    %c0_9 = arith.constant 0 : index
    %c0_10 = arith.constant 0 : index
    %5 = vector.load %arg5[%c0_8, %c0_9, %c0_10] : memref<1x8x32xf32, #tpu.memory_space<vmem>>, vector<1x8x32xf32>
    tpu.vector_store %arg5[%c0_8, %c0_9, %c0_10], %4 {strides = array<i32>} : memref<1x8x32xf32, #tpu.memory_space<vmem>>, vector<1x8x32xf32>,
    %6 = arith.truncf %4 : vector<1x8x32xf32> to vector<1x8x32xbf16>
    %c0_11 = arith.constant 0 : index
    %c0_12 = arith.constant 0 : index
    %c0_13 = arith.constant 0 : index
    %7 = vector.load %arg6[%c0_11, %c0_12, %c0_13] : memref<1x8x32xbf16, #tpu.memory_space<vmem>>, vector<1x8x32xbf16>
    tpu.vector_store %arg6[%c0_11, %c0_12, %c0_13], %6 {strides = array<i32>} : memref<1x8x32xbf16, #tpu.memory_space<vmem>>, vector<1x8x32xbf16>,
    return
  }
  func.func @transform_0(%arg0: i32, %arg1: i32) -> (i32, i32, i32) {
    %c0_i32 = arith.constant 0 : i32
    %c0_i32_0 = arith.constant 0 : i32
    return %arg0, %arg1, %c0_i32 : i32, i32, i32
  }
  func.func @transform_1(%arg0: i32, %arg1: i32) -> (i32, i32, i32) {
    %c0_i32 = arith.constant 0 : i32
    %c0_i32_0 = arith.constant 0 : i32
    return %arg0, %arg1, %c0_i32 : i32, i32, i32
  }
  func.func @transform_2(%arg0: i32, %arg1: i32) -> (i32, i32, i32) {
    %c0_i32 = arith.constant 0 : i32
    %c0_i32_0 = arith.constant 0 : i32
    %c0_i32_1 = arith.constant 0 : i32
    return %c0_i32, %arg1, %c0_i32_0 : i32, i32, i32
  }
  func.func @transform_3(%arg0: i32, %arg1: i32) -> (i32, i32, i32) {
    %c0_i32 = arith.constant 0 : i32
    %c0_i32_0 = arith.constant 0 : i32
    return %arg0, %arg1, %c0_i32 : i32, i32, i32
  }
  func.func @transform_4(%arg0: i32, %arg1: i32) -> (i32, i32, i32) {
    %c0_i32 = arith.constant 0 : i32
    %c0_i32_0 = arith.constant 0 : i32
    return %arg0, %arg1, %c0_i32 : i32, i32, i32
  }
}

module attributes {stable_mosaic.version = 11 : i64} {
  func.func @qkv_projection_kernel(%arg0: i32, %arg1: memref<8x32xbf16, #tpu.memory_space<vmem>>, %arg2: memref<32x96xbf16, #tpu.memory_space<vmem>>, %arg3: memref<1x96xf32, #tpu.memory_space<vmem>>, %arg4: memref<8x32xbf16, #tpu.memory_space<vmem>>, %arg5: memref<8x32xbf16, #tpu.memory_space<vmem>>, %arg6: memref<8x32xbf16, #tpu.memory_space<vmem>>) attributes {dimension_semantics = [#tpu.dimension_semantics<parallel>], iteration_bounds = array<i64: 2>, scalar_prefetch = 0 : i64, scratch_operands = 0 : i64, tpu.core_type = #tpu.core_type<tc>, window_params = [{transform_indices = @transform_0, window_bounds = array<i64: 8, 32>}, {pipeline_mode = #tpu.pipeline_mode<synchronous>, transform_indices = @transform_1, window_bounds = array<i64: 32, 96>}, {pipeline_mode = #tpu.pipeline_mode<synchronous>, transform_indices = @transform_2, window_bounds = array<i64: 1, 96>}, {transform_indices = @transform_3, window_bounds = array<i64: 8, 32>}, {transform_indices = @transform_4, window_bounds = array<i64: 8, 32>}, {transform_indices = @transform_5, window_bounds = array<i64: 8, 32>}]} {
    %c0 = arith.constant 0 : index
    %c0_0 = arith.constant 0 : index
    %0 = vector.load %arg1[%c0, %c0_0] : memref<8x32xbf16, #tpu.memory_space<vmem>>, vector<8x32xbf16>
    %c0_1 = arith.constant 0 : index
    %c0_2 = arith.constant 0 : index
    %1 = vector.load %arg2[%c0_1, %c0_2] : memref<32x96xbf16, #tpu.memory_space<vmem>>, vector<32x96xbf16>
    %cst = arith.constant dense<0.000000e+00> : vector<8x96xf32>
    %2 = tpu.matmul %0, %1, %cst {dimension_numbers = #tpu.dot_dimension_numbers<[1], [0], [0], [1], [0, 0, 1, 1], [], []>} : vector<8x32xbf16>, vector<32x96xbf16>, vector<8x96xf32> -> vector<8x96xf32>
    %c0_3 = arith.constant 0 : index
    %c0_4 = arith.constant 0 : index
    %3 = vector.load %arg3[%c0_3, %c0_4] : memref<1x96xf32, #tpu.memory_space<vmem>>, vector<1x96xf32>
    %4 = vector.broadcast %3 : vector<1x96xf32> to vector<8x96xf32>
    %5 = arith.addf %2, %4 : vector<8x96xf32>
    %6 = arith.truncf %5 : vector<8x96xf32> to vector<8x96xbf16>
    %7 = vector.extract_strided_slice %6 {offsets = [0, 0], sizes = [8, 32], strides = [1, 1]} : vector<8x96xbf16> to vector<8x32xbf16>
    %c0_5 = arith.constant 0 : index
    %c0_6 = arith.constant 0 : index
    %8 = vector.load %arg4[%c0_5, %c0_6] : memref<8x32xbf16, #tpu.memory_space<vmem>>, vector<8x32xbf16>
    tpu.vector_store %arg4[%c0_5, %c0_6], %7 {strides = array<i32>} : memref<8x32xbf16, #tpu.memory_space<vmem>>, vector<8x32xbf16>,
    %9 = vector.extract_strided_slice %6 {offsets = [0, 32], sizes = [8, 32], strides = [1, 1]} : vector<8x96xbf16> to vector<8x32xbf16>
    %c0_7 = arith.constant 0 : index
    %c0_8 = arith.constant 0 : index
    %10 = vector.load %arg5[%c0_7, %c0_8] : memref<8x32xbf16, #tpu.memory_space<vmem>>, vector<8x32xbf16>
    tpu.vector_store %arg5[%c0_7, %c0_8], %9 {strides = array<i32>} : memref<8x32xbf16, #tpu.memory_space<vmem>>, vector<8x32xbf16>,
    %11 = vector.extract_strided_slice %6 {offsets = [0, 64], sizes = [8, 32], strides = [1, 1]} : vector<8x96xbf16> to vector<8x32xbf16>
    %c0_9 = arith.constant 0 : index
    %c0_10 = arith.constant 0 : index
    %12 = vector.load %arg6[%c0_9, %c0_10] : memref<8x32xbf16, #tpu.memory_space<vmem>>, vector<8x32xbf16>
    tpu.vector_store %arg6[%c0_9, %c0_10], %11 {strides = array<i32>} : memref<8x32xbf16, #tpu.memory_space<vmem>>, vector<8x32xbf16>,
    return
  }
  func.func @transform_0(%arg0: i32) -> (i32, i32) {
    %c0_i32 = arith.constant 0 : i32
    %c0_i32_0 = arith.constant 0 : i32
    return %arg0, %c0_i32 : i32, i32
  }
  func.func @transform_1(%arg0: i32) -> (i32, i32) {
    %c0_i32 = arith.constant 0 : i32
    %c0_i32_0 = arith.constant 0 : i32
    %c0_i32_1 = arith.constant 0 : i32
    return %c0_i32, %c0_i32_0 : i32, i32
  }
  func.func @transform_2(%arg0: i32) -> (i32, i32) {
    %c0_i32 = arith.constant 0 : i32
    %c0_i32_0 = arith.constant 0 : i32
    %c0_i32_1 = arith.constant 0 : i32
    return %c0_i32, %c0_i32_0 : i32, i32
  }
  func.func @transform_3(%arg0: i32) -> (i32, i32) {
    %c0_i32 = arith.constant 0 : i32
    %c0_i32_0 = arith.constant 0 : i32
    return %arg0, %c0_i32 : i32, i32
  }
  func.func @transform_4(%arg0: i32) -> (i32, i32) {
    %c0_i32 = arith.constant 0 : i32
    %c0_i32_0 = arith.constant 0 : i32
    return %arg0, %c0_i32 : i32, i32
  }
  func.func @transform_5(%arg0: i32) -> (i32, i32) {
    %c0_i32 = arith.constant 0 : i32
    %c0_i32_0 = arith.constant 0 : i32
    return %arg0, %c0_i32 : i32, i32
  }
}

module attributes {stable_mosaic.version = 11 : i64} {
  func.func @mha_kernel(%arg0: i32, %arg1: i32, %arg2: i32, %arg3: memref<2xi32, #tpu.memory_space<smem>>, %arg4: memref<8x32xbf16, #tpu.memory_space<vmem>>, %arg5: memref<8x32xbf16, #tpu.memory_space<vmem>>, %arg6: memref<8x32xbf16, #tpu.memory_space<vmem>>, %arg7: memref<8x32xbf16, #tpu.memory_space<vmem>>) attributes {dimension_semantics = [#tpu.dimension_semantics<parallel>, #tpu.dimension_semantics<parallel>, #tpu.dimension_semantics<parallel>], iteration_bounds = array<i64: 2, 1, 1>, scalar_prefetch = 1 : i64, scratch_operands = 0 : i64, tpu.core_type = #tpu.core_type<tc>, window_params = [{transform_indices = @transform_0, window_bounds = array<i64: 8, 32>}, {transform_indices = @transform_1, window_bounds = array<i64: 8, 32>}, {transform_indices = @transform_2, window_bounds = array<i64: 8, 32>}, {transform_indices = @transform_3, window_bounds = array<i64: 8, 32>}]} {
    %0 = arith.index_cast %arg0 : i32 to index
    %1 = memref.load %arg3[%0] : memref<2xi32, #tpu.memory_space<smem>>
    %2 = tpu.iota {dimensions = array<i32: 1>} : vector<8x8xi32>
    %3 = vector.broadcast %1 : i32 to vector<8x8xi32>
    %4 = arith.cmpi slt, %2, %3 : vector<8x8xi32>
    %c0 = arith.constant 0 : index
    %c0_0 = arith.constant 0 : index
    %5 = vector.load %arg4[%c0, %c0_0] : memref<8x32xbf16, #tpu.memory_space<vmem>>, vector<8x16xbf16>
    %c0_1 = arith.constant 0 : index
    %c0_2 = arith.constant 0 : index
    %6 = vector.load %arg5[%c0_1, %c0_2] : memref<8x32xbf16, #tpu.memory_space<vmem>>, vector<8x16xbf16>
    %c0_3 = arith.constant 0 : index
    %c0_4 = arith.constant 0 : index
    %7 = vector.load %arg6[%c0_3, %c0_4] : memref<8x32xbf16, #tpu.memory_space<vmem>>, vector<8x16xbf16>
    %cst = arith.constant dense<0.000000e+00> : vector<8x8xf32>
    %8 = tpu.matmul %5, %6, %cst {dimension_numbers = #tpu.dot_dimension_numbers<[1], [1], [0], [0], [0, 0, 1, 0], [], []>} : vector<8x16xbf16>, vector<8x16xbf16>, vector<8x8xf32> -> vector<8x8xf32>
    %cst_5 = arith.constant -1.000000e+06 : f32
    %9 = vector.broadcast %cst_5 : f32 to vector<8x8xf32>
    %10 = arith.select %4, %8, %9 : vector<8x8xi1>, vector<8x8xf32>
    %cst_6 = arith.constant dense<0xFF800000> : vector<8xf32>
    %11 = vector.multi_reduction <maximumf>, %10, %cst_6 [1] : vector<8x8xf32> to vector<8xf32>
    %12 = vector.shape_cast %11 : vector<8xf32> to vector<8x1xf32>
    %13 = vector.broadcast %12 : vector<8x1xf32> to vector<8x8xf32>
    %14 = arith.subf %10, %13 : vector<8x8xf32>
    %15 = math.exp %14 : vector<8x8xf32>
    %cst_7 = arith.constant dense<0.000000e+00> : vector<8xf32>
    %16 = vector.multi_reduction <add>, %15, %cst_7 [1] : vector<8x8xf32> to vector<8xf32>
    %17 = vector.shape_cast %16 : vector<8xf32> to vector<8x1xf32>
    %18 = tpu.reciprocal %17 {approx = true} : vector<8x1xf32> -> vector<8x1xf32>
    %19 = vector.broadcast %18 : vector<8x1xf32> to vector<8x8xf32>
    %20 = arith.mulf %15, %19 : vector<8x8xf32>
    %21 = arith.truncf %20 : vector<8x8xf32> to vector<8x8xbf16>
    %cst_8 = arith.constant dense<0.000000e+00> : vector<8x16xf32>
    %22 = tpu.matmul %21, %7, %cst_8 {dimension_numbers = #tpu.dot_dimension_numbers<[1], [0], [0], [1], [0, 0, 1, 1], [], []>} : vector<8x8xbf16>, vector<8x16xbf16>, vector<8x16xf32> -> vector<8x16xf32>
    %c0_9 = arith.constant 0 : index
    %c16 = arith.constant 16 : index
    %23 = vector.load %arg4[%c0_9, %c16] : memref<8x32xbf16, #tpu.memory_space<vmem>>, vector<8x16xbf16>
    %c0_10 = arith.constant 0 : index
    %c16_11 = arith.constant 16 : index
    %24 = vector.load %arg5[%c0_10, %c16_11] : memref<8x32xbf16, #tpu.memory_space<vmem>>, vector<8x16xbf16>
    %c0_12 = arith.constant 0 : index
    %c16_13 = arith.constant 16 : index
    %25 = vector.load %arg6[%c0_12, %c16_13] : memref<8x32xbf16, #tpu.memory_space<vmem>>, vector<8x16xbf16>
    %cst_14 = arith.constant dense<0.000000e+00> : vector<8x8xf32>
    %26 = tpu.matmul %23, %24, %cst_14 {dimension_numbers = #tpu.dot_dimension_numbers<[1], [1], [0], [0], [0, 0, 1, 0], [], []>} : vector<8x16xbf16>, vector<8x16xbf16>, vector<8x8xf32> -> vector<8x8xf32>
    %cst_15 = arith.constant -1.000000e+06 : f32
    %27 = vector.broadcast %cst_15 : f32 to vector<8x8xf32>
    %28 = arith.select %4, %26, %27 : vector<8x8xi1>, vector<8x8xf32>
    %cst_16 = arith.constant dense<0xFF800000> : vector<8xf32>
    %29 = vector.multi_reduction <maximumf>, %28, %cst_16 [1] : vector<8x8xf32> to vector<8xf32>
    %30 = vector.shape_cast %29 : vector<8xf32> to vector<8x1xf32>
    %31 = vector.broadcast %30 : vector<8x1xf32> to vector<8x8xf32>
    %32 = arith.subf %28, %31 : vector<8x8xf32>
    %33 = math.exp %32 : vector<8x8xf32>
    %cst_17 = arith.constant dense<0.000000e+00> : vector<8xf32>
    %34 = vector.multi_reduction <add>, %33, %cst_17 [1] : vector<8x8xf32> to vector<8xf32>
    %35 = vector.shape_cast %34 : vector<8xf32> to vector<8x1xf32>
    %36 = tpu.reciprocal %35 {approx = true} : vector<8x1xf32> -> vector<8x1xf32>
    %37 = vector.broadcast %36 : vector<8x1xf32> to vector<8x8xf32>
    %38 = arith.mulf %33, %37 : vector<8x8xf32>
    %39 = arith.truncf %38 : vector<8x8xf32> to vector<8x8xbf16>
    %cst_18 = arith.constant dense<0.000000e+00> : vector<8x16xf32>
    %40 = tpu.matmul %39, %25, %cst_18 {dimension_numbers = #tpu.dot_dimension_numbers<[1], [0], [0], [1], [0, 0, 1, 1], [], []>} : vector<8x8xbf16>, vector<8x16xbf16>, vector<8x16xf32> -> vector<8x16xf32>
    %41 = tpu.concatenate %22, %40 in 1 : vector<8x16xf32>, vector<8x16xf32> -> vector<8x32xf32>
    %42 = arith.truncf %41 : vector<8x32xf32> to vector<8x32xbf16>
    %c0_19 = arith.constant 0 : index
    %c0_20 = arith.constant 0 : index
    %43 = vector.load %arg7[%c0_19, %c0_20] : memref<8x32xbf16, #tpu.memory_space<vmem>>, vector<8x32xbf16>
    tpu.vector_store %arg7[%c0_19, %c0_20], %42 {strides = array<i32>} : memref<8x32xbf16, #tpu.memory_space<vmem>>, vector<8x32xbf16>,
    return
  }
  func.func @transform_0(%arg0: i32, %arg1: i32, %arg2: i32, %arg3: memref<2xi32, #tpu.memory_space<smem>>) -> (i32, i32) {
    %c1_i32 = arith.constant 1 : i32
    %0 = arith.muli %arg0, %c1_i32 : i32
    %1 = arith.addi %0, %arg2 : i32
    %c0_i32 = arith.constant 0 : i32
    return %1, %arg1 : i32, i32
  }
  func.func @transform_1(%arg0: i32, %arg1: i32, %arg2: i32, %arg3: memref<2xi32, #tpu.memory_space<smem>>) -> (i32, i32) {
    %c0_i32 = arith.constant 0 : i32
    return %arg0, %arg1 : i32, i32
  }
  func.func @transform_2(%arg0: i32, %arg1: i32, %arg2: i32, %arg3: memref<2xi32, #tpu.memory_space<smem>>) -> (i32, i32) {
    %c0_i32 = arith.constant 0 : i32
    return %arg0, %arg1 : i32, i32
  }
  func.func @transform_3(%arg0: i32, %arg1: i32, %arg2: i32, %arg3: memref<2xi32, #tpu.memory_space<smem>>) -> (i32, i32) {
    %c1_i32 = arith.constant 1 : i32
    %0 = arith.muli %arg0, %c1_i32 : i32
    %1 = arith.addi %0, %arg2 : i32
    %c0_i32 = arith.constant 0 : i32
    return %1, %arg1 : i32, i32
  }
}

module attributes {stable_mosaic.version = 11 : i64} {
  func.func @post_attention_kernel(%arg0: i32, %arg1: i32, %arg2: memref<8x32xbf16, #tpu.memory_space<vmem>>, %arg3: memref<8x32xf32, #tpu.memory_space<vmem>>, %arg4: memref<32x32xbf16, #tpu.memory_space<vmem>>, %arg5: memref<1x32xf32, #tpu.memory_space<vmem>>, %arg6: memref<1x32xf32, #tpu.memory_space<vmem>>, %arg7: memref<1x32xf32, #tpu.memory_space<vmem>>, %arg8: memref<32x64xbf16, #tpu.memory_space<vmem>>, %arg9: memref<1x64xf32, #tpu.memory_space<vmem>>, %arg10: memref<64x32xbf16, #tpu.memory_space<vmem>>, %arg11: memref<1x32xf32, #tpu.memory_space<vmem>>, %arg12: memref<1x32xf32, #tpu.memory_space<vmem>>, %arg13: memref<1x32xf32, #tpu.memory_space<vmem>>, %arg14: memref<8x32xf32, #tpu.memory_space<vmem>>, %arg15: memref<8x32xbf16, #tpu.memory_space<vmem>>, %arg16: memref<8x32xf32, #tpu.memory_space<vmem>>, %arg17: memref<8x32xf32, #tpu.memory_space<vmem>>) attributes {dimension_semantics = [#tpu.dimension_semantics<parallel>, #tpu.dimension_semantics<arbitrary>], iteration_bounds = array<i64: 2, 1>, scalar_prefetch = 0 : i64, scratch_operands = 2 : i64, tpu.core_type = #tpu.core_type<tc>, window_params = [{transform_indices = @transform_0, window_bounds = array<i64: 8, 32>}, {transform_indices = @transform_1, window_bounds = array<i64: 8, 32>}, {pipeline_mode = #tpu.pipeline_mode<synchronous>, transform_indices = @transform_2, window_bounds = array<i64: 32, 32>}, {pipeline_mode = #tpu.pipeline_mode<synchronous>, transform_indices = @transform_3, window_bounds = array<i64: 1, 32>}, {pipeline_mode = #tpu.pipeline_mode<synchronous>, transform_indices = @transform_4, window_bounds = array<i64: 1, 32>}, {pipeline_mode = #tpu.pipeline_mode<synchronous>, transform_indices = @transform_5, window_bounds = array<i64: 1, 32>}, {transform_indices = @transform_6, window_bounds = array<i64: 32, 64>}, {transform_indices = @transform_7, window_bounds = array<i64: 1, 64>}, {transform_indices = @transform_8, window_bounds = array<i64: 64, 32>}, {pipeline_mode = #tpu.pipeline_mode<synchronous>, transform_indices = @transform_9, window_bounds = array<i64: 1, 32>}, {pipeline_mode = #tpu.pipeline_mode<synchronous>, transform_indices = @transform_10, window_bounds = array<i64: 1, 32>}, {pipeline_mode = #tpu.pipeline_mode<synchronous>, transform_indices = @transform_11, window_bounds = array<i64: 1, 32>}, {transform_indices = @transform_12, window_bounds = array<i64: 8, 32>}, {transform_indices = @transform_13, window_bounds = array<i64: 8, 32>}]} {
    %c0_i32 = arith.constant 0 : i32
    %0 = arith.cmpi eq, %arg1, %c0_i32 : i32
    %1 = arith.extui %0 : i1 to i32
    %c0_i32_0 = arith.constant 0 : i32
    %2 = arith.cmpi ne, %1, %c0_i32_0 : i32
    scf.if %2 {
      %c0_16 = arith.constant 0 : index
      %c0_17 = arith.constant 0 : index
      %21 = vector.load %arg2[%c0_16, %c0_17] : memref<8x32xbf16, #tpu.memory_space<vmem>>, vector<8x32xbf16>
      %c0_18 = arith.constant 0 : index
      %c0_19 = arith.constant 0 : index
      %22 = vector.load %arg4[%c0_18, %c0_19] : memref<32x32xbf16, #tpu.memory_space<vmem>>, vector<32x32xbf16>
      %cst_20 = arith.constant dense<0.000000e+00> : vector<8x32xf32>
      %23 = tpu.matmul %21, %22, %cst_20 {dimension_numbers = #tpu.dot_dimension_numbers<[1], [0], [0], [1], [0, 0, 1, 1], [], []>} : vector<8x32xbf16>, vector<32x32xbf16>, vector<8x32xf32> -> vector<8x32xf32>
      %c0_21 = arith.constant 0 : index
      %c0_22 = arith.constant 0 : index
      %24 = vector.load %arg5[%c0_21, %c0_22] : memref<1x32xf32, #tpu.memory_space<vmem>>, vector<1x32xf32>
      %25 = vector.broadcast %24 : vector<1x32xf32> to vector<8x32xf32>
      %26 = arith.addf %23, %25 : vector<8x32xf32>
      %c0_23 = arith.constant 0 : index
      %c0_24 = arith.constant 0 : index
      %27 = vector.load %arg3[%c0_23, %c0_24] : memref<8x32xf32, #tpu.memory_space<vmem>>, vector<8x32xf32>
      %28 = arith.addf %27, %26 : vector<8x32xf32>
      %c0_25 = arith.constant 0 : index
      %c0_26 = arith.constant 0 : index
      %29 = vector.load %arg6[%c0_25, %c0_26] : memref<1x32xf32, #tpu.memory_space<vmem>>, vector<1x32xf32>
      %c0_27 = arith.constant 0 : index
      %c0_28 = arith.constant 0 : index
      %30 = vector.load %arg7[%c0_27, %c0_28] : memref<1x32xf32, #tpu.memory_space<vmem>>, vector<1x32xf32>
      %cst_29 = arith.constant dense<0.000000e+00> : vector<8xf32>
      %31 = vector.multi_reduction <add>, %28, %cst_29 [1] : vector<8x32xf32> to vector<8xf32>
      %32 = vector.shape_cast %31 : vector<8xf32> to vector<8x1xf32>
      %cst_30 = arith.constant 3.200000e+01 : f32
      %33 = vector.broadcast %cst_30 : f32 to vector<8x1xf32>
      %34 = arith.divf %32, %33 : vector<8x1xf32>
      %35 = vector.broadcast %34 : vector<8x1xf32> to vector<8x32xf32>
      %36 = arith.subf %28, %35 : vector<8x32xf32>
      %37 = vector.broadcast %34 : vector<8x1xf32> to vector<8x32xf32>
      %38 = arith.subf %28, %37 : vector<8x32xf32>
      %39 = arith.mulf %36, %38 : vector<8x32xf32>
      %cst_31 = arith.constant dense<0.000000e+00> : vector<8xf32>
      %40 = vector.multi_reduction <add>, %39, %cst_31 [1] : vector<8x32xf32> to vector<8xf32>
      %41 = vector.shape_cast %40 : vector<8xf32> to vector<8x1xf32>
      %cst_32 = arith.constant 3.200000e+01 : f32
      %42 = vector.broadcast %cst_32 : f32 to vector<8x1xf32>
      %43 = arith.divf %41, %42 : vector<8x1xf32>
      %44 = vector.broadcast %34 : vector<8x1xf32> to vector<8x32xf32>
      %45 = arith.subf %28, %44 : vector<8x32xf32>
      %cst_33 = arith.constant 9.99999974E-6 : f32
      %46 = vector.broadcast %cst_33 : f32 to vector<8x1xf32>
      %47 = arith.addf %43, %46 : vector<8x1xf32>
      %48 = math.rsqrt %47 : vector<8x1xf32>
      %49 = vector.broadcast %48 : vector<8x1xf32> to vector<8x32xf32>
      %50 = arith.mulf %45, %49 : vector<8x32xf32>
      %51 = vector.broadcast %29 : vector<1x32xf32> to vector<8x32xf32>
      %52 = arith.mulf %50, %51 : vector<8x32xf32>
      %53 = vector.broadcast %30 : vector<1x32xf32> to vector<8x32xf32>
      %54 = arith.addf %52, %53 : vector<8x32xf32>
      %c0_34 = arith.constant 0 : index
      %c0_35 = arith.constant 0 : index
      %55 = vector.load %arg16[%c0_34, %c0_35] : memref<8x32xf32, #tpu.memory_space<vmem>>, vector<8x32xf32>
      tpu.vector_store %arg16[%c0_34, %c0_35], %54 {strides = array<i32>} : memref<8x32xf32, #tpu.memory_space<vmem>>, vector<8x32xf32>,
      %cst_36 = arith.constant 0.000000e+00 : f32
      %56 = vector.broadcast %cst_36 : f32 to vector<8x32xf32>
      %c0_37 = arith.constant 0 : index
      %c0_38 = arith.constant 0 : index
      %57 = vector.load %arg17[%c0_37, %c0_38] : memref<8x32xf32, #tpu.memory_space<vmem>>, vector<8x32xf32>
      tpu.vector_store %arg17[%c0_37, %c0_38], %56 {strides = array<i32>} : memref<8x32xf32, #tpu.memory_space<vmem>>, vector<8x32xf32>,
    } else {
    }
    %c0 = arith.constant 0 : index
    %c0_1 = arith.constant 0 : index
    %3 = vector.load %arg16[%c0, %c0_1] : memref<8x32xf32, #tpu.memory_space<vmem>>, vector<8x32xf32>
    %4 = arith.truncf %3 : vector<8x32xf32> to vector<8x32xbf16>
    %c0_2 = arith.constant 0 : index
    %c0_3 = arith.constant 0 : index
    %5 = vector.load %arg8[%c0_2, %c0_3] : memref<32x64xbf16, #tpu.memory_space<vmem>>, vector<32x64xbf16>
    %cst = arith.constant dense<0.000000e+00> : vector<8x64xf32>
    %6 = tpu.matmul %4, %5, %cst {dimension_numbers = #tpu.dot_dimension_numbers<[1], [0], [0], [1], [0, 0, 1, 1], [], []>} : vector<8x32xbf16>, vector<32x64xbf16>, vector<8x64xf32> -> vector<8x64xf32>
    %c0_4 = arith.constant 0 : index
    %c0_5 = arith.constant 0 : index
    %7 = vector.load %arg9[%c0_4, %c0_5] : memref<1x64xf32, #tpu.memory_space<vmem>>, vector<1x64xf32>
    %8 = vector.broadcast %7 : vector<1x64xf32> to vector<8x64xf32>
    %9 = arith.addf %6, %8 : vector<8x64xf32>
    %cst_6 = arith.constant 0.000000e+00 : f32
    %10 = vector.broadcast %cst_6 : f32 to vector<8x64xf32>
    %11 = arith.maximumf %9, %10 : vector<8x64xf32>
    %c0_7 = arith.constant 0 : index
    %c0_8 = arith.constant 0 : index
    %12 = vector.load %arg17[%c0_7, %c0_8] : memref<8x32xf32, #tpu.memory_space<vmem>>, vector<8x32xf32>
    %13 = arith.truncf %11 : vector<8x64xf32> to vector<8x64xbf16>
    %c0_9 = arith.constant 0 : index
    %c0_10 = arith.constant 0 : index
    %14 = vector.load %arg10[%c0_9, %c0_10] : memref<64x32xbf16, #tpu.memory_space<vmem>>, vector<64x32xbf16>
    %cst_11 = arith.constant dense<0.000000e+00> : vector<8x32xf32>
    %15 = tpu.matmul %13, %14, %cst_11 {dimension_numbers = #tpu.dot_dimension_numbers<[1], [0], [0], [1], [0, 0, 1, 1], [], []>} : vector<8x64xbf16>, vector<64x32xbf16>, vector<8x32xf32> -> vector<8x32xf32>
    %16 = arith.addf %12, %15 : vector<8x32xf32>
    %c0_12 = arith.constant 0 : index
    %c0_13 = arith.constant 0 : index
    %17 = vector.load %arg17[%c0_12, %c0_13] : memref<8x32xf32, #tpu.memory_space<vmem>>, vector<8x32xf32>
    tpu.vector_store %arg17[%c0_12, %c0_13], %16 {strides = array<i32>} : memref<8x32xf32, #tpu.memory_space<vmem>>, vector<8x32xf32>,
    %c0_i32_14 = arith.constant 0 : i32
    %18 = arith.cmpi eq, %arg1, %c0_i32_14 : i32
    %19 = arith.extui %18 : i1 to i32
    %c0_i32_15 = arith.constant 0 : i32
    %20 = arith.cmpi ne, %19, %c0_i32_15 : i32
    scf.if %20 {
      %c0_16 = arith.constant 0 : index
      %c0_17 = arith.constant 0 : index
      %21 = vector.load %arg16[%c0_16, %c0_17] : memref<8x32xf32, #tpu.memory_space<vmem>>, vector<8x32xf32>
      %c0_18 = arith.constant 0 : index
      %c0_19 = arith.constant 0 : index
      %22 = vector.load %arg17[%c0_18, %c0_19] : memref<8x32xf32, #tpu.memory_space<vmem>>, vector<8x32xf32>
      %23 = arith.addf %21, %22 : vector<8x32xf32>
      %c0_20 = arith.constant 0 : index
      %c0_21 = arith.constant 0 : index
      %24 = vector.load %arg11[%c0_20, %c0_21] : memref<1x32xf32, #tpu.memory_space<vmem>>, vector<1x32xf32>
      %25 = vector.broadcast %24 : vector<1x32xf32> to vector<8x32xf32>
      %26 = arith.addf %23, %25 : vector<8x32xf32>
      %c0_22 = arith.constant 0 : index
      %c0_23 = arith.constant 0 : index
      %27 = vector.load %arg12[%c0_22, %c0_23] : memref<1x32xf32, #tpu.memory_space<vmem>>, vector<1x32xf32>
      %c0_24 = arith.constant 0 : index
      %c0_25 = arith.constant 0 : index
      %28 = vector.load %arg13[%c0_24, %c0_25] : memref<1x32xf32, #tpu.memory_space<vmem>>, vector<1x32xf32>
      %cst_26 = arith.constant dense<0.000000e+00> : vector<8xf32>
      %29 = vector.multi_reduction <add>, %26, %cst_26 [1] : vector<8x32xf32> to vector<8xf32>
      %30 = vector.shape_cast %29 : vector<8xf32> to vector<8x1xf32>
      %cst_27 = arith.constant 3.200000e+01 : f32
      %31 = vector.broadcast %cst_27 : f32 to vector<8x1xf32>
      %32 = arith.divf %30, %31 : vector<8x1xf32>
      %33 = vector.broadcast %32 : vector<8x1xf32> to vector<8x32xf32>
      %34 = arith.subf %26, %33 : vector<8x32xf32>
      %35 = vector.broadcast %32 : vector<8x1xf32> to vector<8x32xf32>
      %36 = arith.subf %26, %35 : vector<8x32xf32>
      %37 = arith.mulf %34, %36 : vector<8x32xf32>
      %cst_28 = arith.constant dense<0.000000e+00> : vector<8xf32>
      %38 = vector.multi_reduction <add>, %37, %cst_28 [1] : vector<8x32xf32> to vector<8xf32>
      %39 = vector.shape_cast %38 : vector<8xf32> to vector<8x1xf32>
      %cst_29 = arith.constant 3.200000e+01 : f32
      %40 = vector.broadcast %cst_29 : f32 to vector<8x1xf32>
      %41 = arith.divf %39, %40 : vector<8x1xf32>
      %42 = vector.broadcast %32 : vector<8x1xf32> to vector<8x32xf32>
      %43 = arith.subf %26, %42 : vector<8x32xf32>
      %cst_30 = arith.constant 9.99999974E-6 : f32
      %44 = vector.broadcast %cst_30 : f32 to vector<8x1xf32>
      %45 = arith.addf %41, %44 : vector<8x1xf32>
      %46 = math.rsqrt %45 : vector<8x1xf32>
      %47 = vector.broadcast %46 : vector<8x1xf32> to vector<8x32xf32>
      %48 = arith.mulf %43, %47 : vector<8x32xf32>
      %49 = vector.broadcast %27 : vector<1x32xf32> to vector<8x32xf32>
      %50 = arith.mulf %48, %49 : vector<8x32xf32>
      %51 = vector.broadcast %28 : vector<1x32xf32> to vector<8x32xf32>
      %52 = arith.addf %50, %51 : vector<8x32xf32>
      %c0_31 = arith.constant 0 : index
      %c0_32 = arith.constant 0 : index
      %53 = vector.load %arg14[%c0_31, %c0_32] : memref<8x32xf32, #tpu.memory_space<vmem>>, vector<8x32xf32>
      tpu.vector_store %arg14[%c0_31, %c0_32], %52 {strides = array<i32>} : memref<8x32xf32, #tpu.memory_space<vmem>>, vector<8x32xf32>,
      %54 = arith.truncf %52 : vector<8x32xf32> to vector<8x32xbf16>
      %c0_33 = arith.constant 0 : index
      %c0_34 = arith.constant 0 : index
      %55 = vector.load %arg15[%c0_33, %c0_34] : memref<8x32xbf16, #tpu.memory_space<vmem>>, vector<8x32xbf16>
      tpu.vector_store %arg15[%c0_33, %c0_34], %54 {strides = array<i32>} : memref<8x32xbf16, #tpu.memory_space<vmem>>, vector<8x32xbf16>,
    } else {
    }
    return
  }
  func.func @transform_0(%arg0: i32, %arg1: i32) -> (i32, i32) {
    %c0_i32 = arith.constant 0 : i32
    %c0_i32_0 = arith.constant 0 : i32
    return %arg0, %c0_i32 : i32, i32
  }
  func.func @transform_1(%arg0: i32, %arg1: i32) -> (i32, i32) {
    %c0_i32 = arith.constant 0 : i32
    %c0_i32_0 = arith.constant 0 : i32
    return %arg0, %c0_i32 : i32, i32
  }
  func.func @transform_2(%arg0: i32, %arg1: i32) -> (i32, i32) {
    %c0_i32 = arith.constant 0 : i32
    %c0_i32_0 = arith.constant 0 : i32
    %c0_i32_1 = arith.constant 0 : i32
    return %c0_i32, %c0_i32_0 : i32, i32
  }
  func.func @transform_3(%arg0: i32, %arg1: i32) -> (i32, i32) {
    %c0_i32 = arith.constant 0 : i32
    %c0_i32_0 = arith.constant 0 : i32
    %c0_i32_1 = arith.constant 0 : i32
    return %c0_i32, %c0_i32_0 : i32, i32
  }
  func.func @transform_4(%arg0: i32, %arg1: i32) -> (i32, i32) {
    %c0_i32 = arith.constant 0 : i32
    %c0_i32_0 = arith.constant 0 : i32
    %c0_i32_1 = arith.constant 0 : i32
    return %c0_i32, %c0_i32_0 : i32, i32
  }
  func.func @transform_5(%arg0: i32, %arg1: i32) -> (i32, i32) {
    %c0_i32 = arith.constant 0 : i32
    %c0_i32_0 = arith.constant 0 : i32
    %c0_i32_1 = arith.constant 0 : i32
    return %c0_i32, %c0_i32_0 : i32, i32
  }
  func.func @transform_6(%arg0: i32, %arg1: i32) -> (i32, i32) {
    %c0_i32 = arith.constant 0 : i32
    %c0_i32_0 = arith.constant 0 : i32
    return %c0_i32, %arg1 : i32, i32
  }
  func.func @transform_7(%arg0: i32, %arg1: i32) -> (i32, i32) {
    %c0_i32 = arith.constant 0 : i32
    %c0_i32_0 = arith.constant 0 : i32
    return %c0_i32, %arg1 : i32, i32
  }
  func.func @transform_8(%arg0: i32, %arg1: i32) -> (i32, i32) {
    %c0_i32 = arith.constant 0 : i32
    %c0_i32_0 = arith.constant 0 : i32
    return %arg1, %c0_i32 : i32, i32
  }
  func.func @transform_9(%arg0: i32, %arg1: i32) -> (i32, i32) {
    %c0_i32 = arith.constant 0 : i32
    %c0_i32_0 = arith.constant 0 : i32
    %c0_i32_1 = arith.constant 0 : i32
    return %c0_i32, %c0_i32_0 : i32, i32
  }
  func.func @transform_10(%arg0: i32, %arg1: i32) -> (i32, i32) {
    %c0_i32 = arith.constant 0 : i32
    %c0_i32_0 = arith.constant 0 : i32
    %c0_i32_1 = arith.constant 0 : i32
    return %c0_i32, %c0_i32_0 : i32, i32
  }
  func.func @transform_11(%arg0: i32, %arg1: i32) -> (i32, i32) {
    %c0_i32 = arith.constant 0 : i32
    %c0_i32_0 = arith.constant 0 : i32
    %c0_i32_1 = arith.constant 0 : i32
    return %c0_i32, %c0_i32_0 : i32, i32
  }
  func.func @transform_12(%arg0: i32, %arg1: i32) -> (i32, i32) {
    %c0_i32 = arith.constant 0 : i32
    %c0_i32_0 = arith.constant 0 : i32
    return %arg0, %c0_i32 : i32, i32
  }
  func.func @transform_13(%arg0: i32, %arg1: i32) -> (i32, i32) {
    %c0_i32 = arith.constant 0 : i32
    %c0_i32_0 = arith.constant 0 : i32
    return %arg0, %c0_i32 : i32, i32
  }
}

module attributes {stable_mosaic.version = 11 : i64} {
  func.func @post_attention_kernel(%arg0: i32, %arg1: i32, %arg2: memref<8x32xbf16, #tpu.memory_space<vmem>>, %arg3: memref<8x32xf32, #tpu.memory_space<vmem>>, %arg4: memref<32x32xbf16, #tpu.memory_space<vmem>>, %arg5: memref<1x32xf32, #tpu.memory_space<vmem>>, %arg6: memref<1x32xf32, #tpu.memory_space<vmem>>, %arg7: memref<1x32xf32, #tpu.memory_space<vmem>>, %arg8: memref<32x64xbf16, #tpu.memory_space<vmem>>, %arg9: memref<1x64xf32, #tpu.memory_space<vmem>>, %arg10: memref<64x32xbf16, #tpu.memory_space<vmem>>, %arg11: memref<1x32xf32, #tpu.memory_space<vmem>>, %arg12: memref<1x32xf32, #tpu.memory_space<vmem>>, %arg13: memref<1x32xf32, #tpu.memory_space<vmem>>, %arg14: memref<8x32xf32, #tpu.memory_space<vmem>>, %arg15: memref<8x32xbf16, #tpu.memory_space<vmem>>, %arg16: memref<8x32xf32, #tpu.memory_space<vmem>>, %arg17: memref<8x32xf32, #tpu.memory_space<vmem>>) attributes {dimension_semantics = [#tpu.dimension_semantics<parallel>, #tpu.dimension_semantics<arbitrary>], iteration_bounds = array<i64: 2, 1>, scalar_prefetch = 0 : i64, scratch_operands = 2 : i64, tpu.core_type = #tpu.core_type<tc>, window_params = [{transform_indices = @transform_0, window_bounds = array<i64: 8, 32>}, {transform_indices = @transform_1, window_bounds = array<i64: 8, 32>}, {pipeline_mode = #tpu.pipeline_mode<synchronous>, transform_indices = @transform_2, window_bounds = array<i64: 32, 32>}, {pipeline_mode = #tpu.pipeline_mode<synchronous>, transform_indices = @transform_3, window_bounds = array<i64: 1, 32>}, {pipeline_mode = #tpu.pipeline_mode<synchronous>, transform_indices = @transform_4, window_bounds = array<i64: 1, 32>}, {pipeline_mode = #tpu.pipeline_mode<synchronous>, transform_indices = @transform_5, window_bounds = array<i64: 1, 32>}, {transform_indices = @transform_6, window_bounds = array<i64: 32, 64>}, {transform_indices = @transform_7, window_bounds = array<i64: 1, 64>}, {transform_indices = @transform_8, window_bounds = array<i64: 64, 32>}, {pipeline_mode = #tpu.pipeline_mode<synchronous>, transform_indices = @transform_9, window_bounds = array<i64: 1, 32>}, {pipeline_mode = #tpu.pipeline_mode<synchronous>, transform_indices = @transform_10, window_bounds = array<i64: 1, 32>}, {pipeline_mode = #tpu.pipeline_mode<synchronous>, transform_indices = @transform_11, window_bounds = array<i64: 1, 32>}, {transform_indices = @transform_12, window_bounds = array<i64: 8, 32>}, {transform_indices = @transform_13, window_bounds = array<i64: 8, 32>}]} {
    %c0_i32 = arith.constant 0 : i32
    %0 = arith.cmpi eq, %arg1, %c0_i32 : i32
    %1 = arith.extui %0 : i1 to i32
    %c0_i32_0 = arith.constant 0 : i32
    %2 = arith.cmpi ne, %1, %c0_i32_0 : i32
    scf.if %2 {
      %c0_16 = arith.constant 0 : index
      %c0_17 = arith.constant 0 : index
      %21 = vector.load %arg2[%c0_16, %c0_17] : memref<8x32xbf16, #tpu.memory_space<vmem>>, vector<8x32xbf16>
      %c0_18 = arith.constant 0 : index
      %c0_19 = arith.constant 0 : index
      %22 = vector.load %arg4[%c0_18, %c0_19] : memref<32x32xbf16, #tpu.memory_space<vmem>>, vector<32x32xbf16>
      %cst_20 = arith.constant dense<0.000000e+00> : vector<8x32xf32>
      %23 = tpu.matmul %21, %22, %cst_20 {dimension_numbers = #tpu.dot_dimension_numbers<[1], [0], [0], [1], [0, 0, 1, 1], [], []>} : vector<8x32xbf16>, vector<32x32xbf16>, vector<8x32xf32> -> vector<8x32xf32>
      %c0_21 = arith.constant 0 : index
      %c0_22 = arith.constant 0 : index
      %24 = vector.load %arg5[%c0_21, %c0_22] : memref<1x32xf32, #tpu.memory_space<vmem>>, vector<1x32xf32>
      %25 = vector.broadcast %24 : vector<1x32xf32> to vector<8x32xf32>
      %26 = arith.addf %23, %25 : vector<8x32xf32>
      %c0_23 = arith.constant 0 : index
      %c0_24 = arith.constant 0 : index
      %27 = vector.load %arg3[%c0_23, %c0_24] : memref<8x32xf32, #tpu.memory_space<vmem>>, vector<8x32xf32>
      %28 = arith.addf %27, %26 : vector<8x32xf32>
      %c0_25 = arith.constant 0 : index
      %c0_26 = arith.constant 0 : index
      %29 = vector.load %arg6[%c0_25, %c0_26] : memref<1x32xf32, #tpu.memory_space<vmem>>, vector<1x32xf32>
      %c0_27 = arith.constant 0 : index
      %c0_28 = arith.constant 0 : index
      %30 = vector.load %arg7[%c0_27, %c0_28] : memref<1x32xf32, #tpu.memory_space<vmem>>, vector<1x32xf32>
      %cst_29 = arith.constant dense<0.000000e+00> : vector<8xf32>
      %31 = vector.multi_reduction <add>, %28, %cst_29 [1] : vector<8x32xf32> to vector<8xf32>
      %32 = vector.shape_cast %31 : vector<8xf32> to vector<8x1xf32>
      %cst_30 = arith.constant 3.200000e+01 : f32
      %33 = vector.broadcast %cst_30 : f32 to vector<8x1xf32>
      %34 = arith.divf %32, %33 : vector<8x1xf32>
      %35 = vector.broadcast %34 : vector<8x1xf32> to vector<8x32xf32>
      %36 = arith.subf %28, %35 : vector<8x32xf32>
      %37 = vector.broadcast %34 : vector<8x1xf32> to vector<8x32xf32>
      %38 = arith.subf %28, %37 : vector<8x32xf32>
      %39 = arith.mulf %36, %38 : vector<8x32xf32>
      %cst_31 = arith.constant dense<0.000000e+00> : vector<8xf32>
      %40 = vector.multi_reduction <add>, %39, %cst_31 [1] : vector<8x32xf32> to vector<8xf32>
      %41 = vector.shape_cast %40 : vector<8xf32> to vector<8x1xf32>
      %cst_32 = arith.constant 3.200000e+01 : f32
      %42 = vector.broadcast %cst_32 : f32 to vector<8x1xf32>
      %43 = arith.divf %41, %42 : vector<8x1xf32>
      %44 = vector.broadcast %34 : vector<8x1xf32> to vector<8x32xf32>
      %45 = arith.subf %28, %44 : vector<8x32xf32>
      %cst_33 = arith.constant 9.99999974E-6 : f32
      %46 = vector.broadcast %cst_33 : f32 to vector<8x1xf32>
      %47 = arith.addf %43, %46 : vector<8x1xf32>
      %48 = math.rsqrt %47 : vector<8x1xf32>
      %49 = vector.broadcast %48 : vector<8x1xf32> to vector<8x32xf32>
      %50 = arith.mulf %45, %49 : vector<8x32xf32>
      %51 = vector.broadcast %29 : vector<1x32xf32> to vector<8x32xf32>
      %52 = arith.mulf %50, %51 : vector<8x32xf32>
      %53 = vector.broadcast %30 : vector<1x32xf32> to vector<8x32xf32>
      %54 = arith.addf %52, %53 : vector<8x32xf32>
      %c0_34 = arith.constant 0 : index
      %c0_35 = arith.constant 0 : index
      %55 = vector.load %arg16[%c0_34, %c0_35] : memref<8x32xf32, #tpu.memory_space<vmem>>, vector<8x32xf32>
      tpu.vector_store %arg16[%c0_34, %c0_35], %54 {strides = array<i32>} : memref<8x32xf32, #tpu.memory_space<vmem>>, vector<8x32xf32>,
      %cst_36 = arith.constant 0.000000e+00 : f32
      %56 = vector.broadcast %cst_36 : f32 to vector<8x32xf32>
      %c0_37 = arith.constant 0 : index
      %c0_38 = arith.constant 0 : index
      %57 = vector.load %arg17[%c0_37, %c0_38] : memref<8x32xf32, #tpu.memory_space<vmem>>, vector<8x32xf32>
      tpu.vector_store %arg17[%c0_37, %c0_38], %56 {strides = array<i32>} : memref<8x32xf32, #tpu.memory_space<vmem>>, vector<8x32xf32>,
    } else {
    }
    %c0 = arith.constant 0 : index
    %c0_1 = arith.constant 0 : index
    %3 = vector.load %arg16[%c0, %c0_1] : memref<8x32xf32, #tpu.memory_space<vmem>>, vector<8x32xf32>
    %4 = arith.truncf %3 : vector<8x32xf32> to vector<8x32xbf16>
    %c0_2 = arith.constant 0 : index
    %c0_3 = arith.constant 0 : index
    %5 = vector.load %arg8[%c0_2, %c0_3] : memref<32x64xbf16, #tpu.memory_space<vmem>>, vector<32x64xbf16>
    %cst = arith.constant dense<0.000000e+00> : vector<8x64xf32>
    %6 = tpu.matmul %4, %5, %cst {dimension_numbers = #tpu.dot_dimension_numbers<[1], [0], [0], [1], [0, 0, 1, 1], [], []>} : vector<8x32xbf16>, vector<32x64xbf16>, vector<8x64xf32> -> vector<8x64xf32>
    %c0_4 = arith.constant 0 : index
    %c0_5 = arith.constant 0 : index
    %7 = vector.load %arg9[%c0_4, %c0_5] : memref<1x64xf32, #tpu.memory_space<vmem>>, vector<1x64xf32>
    %8 = vector.broadcast %7 : vector<1x64xf32> to vector<8x64xf32>
    %9 = arith.addf %6, %8 : vector<8x64xf32>
    %cst_6 = arith.constant 0.000000e+00 : f32
    %10 = vector.broadcast %cst_6 : f32 to vector<8x64xf32>
    %11 = arith.maximumf %9, %10 : vector<8x64xf32>
    %c0_7 = arith.constant 0 : index
    %c0_8 = arith.constant 0 : index
    %12 = vector.load %arg17[%c0_7, %c0_8] : memref<8x32xf32, #tpu.memory_space<vmem>>, vector<8x32xf32>
    %13 = arith.truncf %11 : vector<8x64xf32> to vector<8x64xbf16>
    %c0_9 = arith.constant 0 : index
    %c0_10 = arith.constant 0 : index
    %14 = vector.load %arg10[%c0_9, %c0_10] : memref<64x32xbf16, #tpu.memory_space<vmem>>, vector<64x32xbf16>
    %cst_11 = arith.constant dense<0.000000e+00> : vector<8x32xf32>
    %15 = tpu.matmul %13, %14, %cst_11 {dimension_numbers = #tpu.dot_dimension_numbers<[1], [0], [0], [1], [0, 0, 1, 1], [], []>} : vector<8x64xbf16>, vector<64x32xbf16>, vector<8x32xf32> -> vector<8x32xf32>
    %16 = arith.addf %12, %15 : vector<8x32xf32>
    %c0_12 = arith.constant 0 : index
    %c0_13 = arith.constant 0 : index
    %17 = vector.load %arg17[%c0_12, %c0_13] : memref<8x32xf32, #tpu.memory_space<vmem>>, vector<8x32xf32>
    tpu.vector_store %arg17[%c0_12, %c0_13], %16 {strides = array<i32>} : memref<8x32xf32, #tpu.memory_space<vmem>>, vector<8x32xf32>,
    %c0_i32_14 = arith.constant 0 : i32
    %18 = arith.cmpi eq, %arg1, %c0_i32_14 : i32
    %19 = arith.extui %18 : i1 to i32
    %c0_i32_15 = arith.constant 0 : i32
    %20 = arith.cmpi ne, %19, %c0_i32_15 : i32
    scf.if %20 {
      %c0_16 = arith.constant 0 : index
      %c0_17 = arith.constant 0 : index
      %21 = vector.load %arg16[%c0_16, %c0_17] : memref<8x32xf32, #tpu.memory_space<vmem>>, vector<8x32xf32>
      %c0_18 = arith.constant 0 : index
      %c0_19 = arith.constant 0 : index
      %22 = vector.load %arg17[%c0_18, %c0_19] : memref<8x32xf32, #tpu.memory_space<vmem>>, vector<8x32xf32>
      %23 = arith.addf %21, %22 : vector<8x32xf32>
      %c0_20 = arith.constant 0 : index
      %c0_21 = arith.constant 0 : index
      %24 = vector.load %arg11[%c0_20, %c0_21] : memref<1x32xf32, #tpu.memory_space<vmem>>, vector<1x32xf32>
      %25 = vector.broadcast %24 : vector<1x32xf32> to vector<8x32xf32>
      %26 = arith.addf %23, %25 : vector<8x32xf32>
      %c0_22 = arith.constant 0 : index
      %c0_23 = arith.constant 0 : index
      %27 = vector.load %arg12[%c0_22, %c0_23] : memref<1x32xf32, #tpu.memory_space<vmem>>, vector<1x32xf32>
      %c0_24 = arith.constant 0 : index
      %c0_25 = arith.constant 0 : index
      %28 = vector.load %arg13[%c0_24, %c0_25] : memref<1x32xf32, #tpu.memory_space<vmem>>, vector<1x32xf32>
      %cst_26 = arith.constant dense<0.000000e+00> : vector<8xf32>
      %29 = vector.multi_reduction <add>, %26, %cst_26 [1] : vector<8x32xf32> to vector<8xf32>
      %30 = vector.shape_cast %29 : vector<8xf32> to vector<8x1xf32>
      %cst_27 = arith.constant 3.200000e+01 : f32
      %31 = vector.broadcast %cst_27 : f32 to vector<8x1xf32>
      %32 = arith.divf %30, %31 : vector<8x1xf32>
      %33 = vector.broadcast %32 : vector<8x1xf32> to vector<8x32xf32>
      %34 = arith.subf %26, %33 : vector<8x32xf32>
      %35 = vector.broadcast %32 : vector<8x1xf32> to vector<8x32xf32>
      %36 = arith.subf %26, %35 : vector<8x32xf32>
      %37 = arith.mulf %34, %36 : vector<8x32xf32>
      %cst_28 = arith.constant dense<0.000000e+00> : vector<8xf32>
      %38 = vector.multi_reduction <add>, %37, %cst_28 [1] : vector<8x32xf32> to vector<8xf32>
      %39 = vector.shape_cast %38 : vector<8xf32> to vector<8x1xf32>
      %cst_29 = arith.constant 3.200000e+01 : f32
      %40 = vector.broadcast %cst_29 : f32 to vector<8x1xf32>
      %41 = arith.divf %39, %40 : vector<8x1xf32>
      %42 = vector.broadcast %32 : vector<8x1xf32> to vector<8x32xf32>
      %43 = arith.subf %26, %42 : vector<8x32xf32>
      %cst_30 = arith.constant 9.99999974E-6 : f32
      %44 = vector.broadcast %cst_30 : f32 to vector<8x1xf32>
      %45 = arith.addf %41, %44 : vector<8x1xf32>
      %46 = math.rsqrt %45 : vector<8x1xf32>
      %47 = vector.broadcast %46 : vector<8x1xf32> to vector<8x32xf32>
      %48 = arith.mulf %43, %47 : vector<8x32xf32>
      %49 = vector.broadcast %27 : vector<1x32xf32> to vector<8x32xf32>
      %50 = arith.mulf %48, %49 : vector<8x32xf32>
      %51 = vector.broadcast %28 : vector<1x32xf32> to vector<8x32xf32>
      %52 = arith.addf %50, %51 : vector<8x32xf32>
      %c0_31 = arith.constant 0 : index
      %c0_32 = arith.constant 0 : index
      %53 = vector.load %arg14[%c0_31, %c0_32] : memref<8x32xf32, #tpu.memory_space<vmem>>, vector<8x32xf32>
      tpu.vector_store %arg14[%c0_31, %c0_32], %52 {strides = array<i32>} : memref<8x32xf32, #tpu.memory_space<vmem>>, vector<8x32xf32>,
      %54 = arith.truncf %52 : vector<8x32xf32> to vector<8x32xbf16>
      %c0_33 = arith.constant 0 : index
      %c0_34 = arith.constant 0 : index
      %55 = vector.load %arg15[%c0_33, %c0_34] : memref<8x32xbf16, #tpu.memory_space<vmem>>, vector<8x32xbf16>
      tpu.vector_store %arg15[%c0_33, %c0_34], %54 {strides = array<i32>} : memref<8x32xbf16, #tpu.memory_space<vmem>>, vector<8x32xbf16>,
    } else {
    }
    return
  }
  func.func @transform_0(%arg0: i32, %arg1: i32) -> (i32, i32) {
    %c0_i32 = arith.constant 0 : i32
    %c0_i32_0 = arith.constant 0 : i32
    return %arg0, %c0_i32 : i32, i32
  }
  func.func @transform_1(%arg0: i32, %arg1: i32) -> (i32, i32) {
    %c0_i32 = arith.constant 0 : i32
    %c0_i32_0 = arith.constant 0 : i32
    return %arg0, %c0_i32 : i32, i32
  }
  func.func @transform_2(%arg0: i32, %arg1: i32) -> (i32, i32) {
    %c0_i32 = arith.constant 0 : i32
    %c0_i32_0 = arith.constant 0 : i32
    %c0_i32_1 = arith.constant 0 : i32
    return %c0_i32, %c0_i32_0 : i32, i32
  }
  func.func @transform_3(%arg0: i32, %arg1: i32) -> (i32, i32) {
    %c0_i32 = arith.constant 0 : i32
    %c0_i32_0 = arith.constant 0 : i32
    %c0_i32_1 = arith.constant 0 : i32
    return %c0_i32, %c0_i32_0 : i32, i32
  }
  func.func @transform_4(%arg0: i32, %arg1: i32) -> (i32, i32) {
    %c0_i32 = arith.constant 0 : i32
    %c0_i32_0 = arith.constant 0 : i32
    %c0_i32_1 = arith.constant 0 : i32
    return %c0_i32, %c0_i32_0 : i32, i32
  }
  func.func @transform_5(%arg0: i32, %arg1: i32) -> (i32, i32) {
    %c0_i32 = arith.constant 0 : i32
    %c0_i32_0 = arith.constant 0 : i32
    %c0_i32_1 = arith.constant 0 : i32
    return %c0_i32, %c0_i32_0 : i32, i32
  }
  func.func @transform_6(%arg0: i32, %arg1: i32) -> (i32, i32) {
    %c0_i32 = arith.constant 0 : i32
    %c0_i32_0 = arith.constant 0 : i32
    return %c0_i32, %arg1 : i32, i32
  }
  func.func @transform_7(%arg0: i32, %arg1: i32) -> (i32, i32) {
    %c0_i32 = arith.constant 0 : i32
    %c0_i32_0 = arith.constant 0 : i32
    return %c0_i32, %arg1 : i32, i32
  }
  func.func @transform_8(%arg0: i32, %arg1: i32) -> (i32, i32) {
    %c0_i32 = arith.constant 0 : i32
    %c0_i32_0 = arith.constant 0 : i32
    return %arg1, %c0_i32 : i32, i32
  }
  func.func @transform_9(%arg0: i32, %arg1: i32) -> (i32, i32) {
    %c0_i32 = arith.constant 0 : i32
    %c0_i32_0 = arith.constant 0 : i32
    %c0_i32_1 = arith.constant 0 : i32
    return %c0_i32, %c0_i32_0 : i32, i32
  }
  func.func @transform_10(%arg0: i32, %arg1: i32) -> (i32, i32) {
    %c0_i32 = arith.constant 0 : i32
    %c0_i32_0 = arith.constant 0 : i32
    %c0_i32_1 = arith.constant 0 : i32
    return %c0_i32, %c0_i32_0 : i32, i32
  }
  func.func @transform_11(%arg0: i32, %arg1: i32) -> (i32, i32) {
    %c0_i32 = arith.constant 0 : i32
    %c0_i32_0 = arith.constant 0 : i32
    %c0_i32_1 = arith.constant 0 : i32
    return %c0_i32, %c0_i32_0 : i32, i32
  }
  func.func @transform_12(%arg0: i32, %arg1: i32) -> (i32, i32) {
    %c0_i32 = arith.constant 0 : i32
    %c0_i32_0 = arith.constant 0 : i32
    return %arg0, %c0_i32 : i32, i32
  }
  func.func @transform_13(%arg0: i32, %arg1: i32) -> (i32, i32) {
    %c0_i32 = arith.constant 0 : i32
    %c0_i32_0 = arith.constant 0 : i32
    return %arg0, %c0_i32 : i32, i32
  }
}

</mosaic_0001>

<bundles_post_ra>
// kernel: bert_encoder_forward.8
= control target key start
LH: loop header
LB: loop body
LE: loop exit
PB: predicated region body
PF: predicated region fallthrough
CT: control target
= control target key end

     0   :  { %s523_s18 = smov 0   ;;  %s555_s0 = inlined_call_operand.vmem [shape: bf16[16,32], index: 0, kind: input, shape index: {}]   ;;  %s556_s1 = inlined_call_operand.vmem [shape: bf16[32,96], index: 1, kind: input, shape index: {}]   ;;  %s557_s2 = inlined_call_operand.vmem [shape: f32[1,96], index: 2, kind: input, shape index: {}]   ;;  %s558_s3 = inlined_call_operand.vmem [shape: bf16[16,32], index: 3, kind: output, shape index: {0}]   ;;  %s559_s4 = inlined_call_operand.vmem [shape: bf16[16,32], index: 4, kind: output, shape index: {1}]   ;;  %s560_s5 = inlined_call_operand.vmem [shape: bf16[16,32], index: 5, kind: output, shape index: {2}]  }
   0x1 LB: > { %s439_s19 = sadd.s32 4294967295, %s487_s18   ;;  %p443_p0 = scmp.ge.s32.totalorder %s487_s18, 1  ;;  %s487_s18 = sphi %s523_s18, %s16_s18  }
   0x2   : > { %p191_p1 = scmp.lt.s32.totalorder %s487_s18, 3 }
   0x4   : > { %p192_p2 = pnand %p443_p0, %p191_p1 }
   0x5   : > { %v479_v0 = vld [vmem:[%s556_s1] sm:$0xff] (!%p192_p2)   ;;  %v489_v1 = vmov (!%p192_p2), 0.0   ;;  %v480_v2 = vld [vmem:[%s556_s1 + $0x8] sm:$0xff] (!%p192_p2)   ;;  %vm490_vm0 = vmmov (!%p192_p2), 0   ;;  %p225_p3 = scmp.lt.s32.totalorder (!%p192_p2), %s439_s19, 1  ;;  %vm266_vm1 = vcmask (!%p192_p2), 261120  }
   0x6   : > { %195 = sbr.rel (%p192_p2) target bundleno = 353 (0x161), region = 32  ;;  %459 = vmatprep.subr.bf16.mxu0 (!%p192_p2), %v489_v1  ;;  %463 = vmatprep.mubr.msk.bf16.mxu0 (!%p192_p2), %vm490_vm0, %v489_v1  ;;  %v448_v4 = vld [vmem:[%s557_s2] ss:$0 sm:$0xff] (!%p192_p2)  ;;  %vm311_vm2 = vcmask (!%p192_p2), 257024   ;;  %s491_s8 = smov (!%p192_p2), 96  }
   0x7   : > { %460 = vmatpush3.bf16.msra.mxu0 (!%p192_p2), %v479_v0  ;;  %s492_s9 = smov (!%p192_p2), 64  }
   0x8   : > { %461 = vmatprep.subr.bf16.mxu0 (!%p192_p2), %v489_v1 }
   0xb   : > { %462 = vmatpush3.bf16.msra.mxu0 (!%p192_p2), %v480_v2 }
   0xd   : > { %s562_s19 = smov (!%p225_p3, %s439_s19), 1 }
   0xe   : > { %s444_s24 = sshll.u32 %s562_s19, 2 }
   0xf   : > { %s228_s27 = scalar_lea.vmem %s555_s0, %s444_s24  ;;  %s232_s7 = scalar_lea.vmem %s558_s3, %s444_s24 }
  0x10   : > { %v242_v3 = vld [vmem:[%s228_s27] sm:$0xf]  ;;  %s236_s12 = scalar_lea.vmem %s559_s4, %s444_s24  ;;  %s240_s15 = scalar_lea.vmem %s560_s5, %s444_s24 }
  0x11   : > { %464 = vmatmul.mubr.msk.bf16.vlgmr.msra.gmra.mrb[0].mxu0 %vm266_vm1, %v242_v3 }
  0xe4   : > { %v304_v5 = vpop.f32.mrb[0].mxu0 }
  0xe5   : > { %v305_v6 = vadd.f32 %v448_v4, %v304_v5  ;;  %v465_v7 = vpop.f32.mrb[1].mxu0 }
  0xe6   : > { %v307_v8 = vpop.f32.mrb[2].mxu0 }
  0xe7   : > { %v310_v9 = vpack.c.bf16 %v305_v6, %v305_v6  ;;  %v466_v10 = vpop.f32.mrb[3].mxu0 }
  0xe9   : > { %316 = vrot.lane.b32.xlu0 %v310_v9, %s491_s8  ;;  %312 = vst.msk [vmem:[%s232_s7] sm:$0xf] %vm311_vm2, %v310_v9 }
  0xed   : > { %320 = vrot.lane.b32.xlu0 %v310_v9, %s492_s9 }
 0x15b   : > { %v317_v11 = vpop.permute.xlu0 %316 }
 0x15c   : > { %319 = vst.msk [vmem:[%s236_s12] sm:$0xf] %vm311_vm2, %v317_v11 }
 0x15f   : > { %v321_v12 = vpop.permute.xlu0 %320 }
 0x160   : > { %323 = vst.msk [vmem:[%s240_s15] sm:$0xf] %vm311_vm2, %v321_v12 }
 0x161 PF: > { %s16_s18 = sadd.s32 1, %s487_s18  }
 0x162   : > { %p13_p4 = scmp.ge.s32.totalorder %s16_s18, 4  }
 0x164   :  { %15 = sbr.rel (!%p13_p4) target bundleno = 1 (0x1), region = 86 }

// kernel: bert_encoder_forward.7
= control target key start
LH: loop header
LB: loop body
LE: loop exit
PB: predicated region body
PF: predicated region fallthrough
CT: control target
= control target key end

     0   :  { %s529_s15 = smov 0   ;;  %s531_s16 = smov 0   ;;  %s568_s0 = inlined_call_operand.vmem [shape: f32[2,8,32], index: 0, kind: input, shape index: {}]   ;;  %s569_s1 = inlined_call_operand.vmem [shape: f32[2,8,32], index: 1, kind: input, shape index: {}]   ;;  %s570_s2 = inlined_call_operand.vmem [shape: f32[1,8,32], index: 2, kind: input, shape index: {}]   ;;  %s571_s3 = inlined_call_operand.vmem [shape: f32[2,8,32], index: 3, kind: output, shape index: {0}]   ;;  %s572_s4 = inlined_call_operand.vmem [shape: bf16[2,8,32], index: 4, kind: output, shape index: {1}]  }
   0x1   :  { %s533_s17 = smov 0  }
   0x2 LB: > { %s27_s18 = sadd.s32 1, %s498_s16  ;;  %p449_p0 = scmp.ge.s32.totalorder %s502_s17, 1  ;;  %s502_s17 = sphi %s533_s17, %s15_s17   ;;  %s498_s16 = sphi %s531_s16, %s574_s16   ;;  %s494_s15 = sphi %s529_s15, %s573_s15  }
   0x3   : > { %p29_p1 = scmp.ge.s32.totalorder %s27_s18, 2  ;;  %p208_p2 = scmp.lt.s32.totalorder %s502_s17, 3 }
   0x5   : > { %s576_s18 = smov (%p29_p1, %s27_s18), 0  ;;  %p209_p3 = pnand %p449_p0, %p208_p2 }
   0x6   : > { %p256_p4 = scmp.lt.s32.totalorder (!%p209_p3), %s494_s15, 1  ;;  %v291_v2 = vld [vmem:[%s570_s2] sm:$0xff] (!%p209_p3)  ;;  %vm293_vm0 = vcmask (!%p209_p3), 261120   ;;  %vm296_vm1 = vcmask (!%p209_p3), 257024  }
   0x7   : > { %212 = sbr.rel (%p209_p3) target bundleno = 26 (0x1a), region = 32 }
   0xe   : > { %s578_s15 = smov (!%p256_p4, %s494_s15), 1 }
   0xf   : > { %s450_s19 = sshll.u32 %s578_s15, 3  ;;  %s453_s28 = sshll.u32 %s578_s15, 2 }
  0x10   : > { %s262_s22 = scalar_lea.vmem %s568_s0, %s450_s19  ;;  %s269_s25 = scalar_lea.vmem %s569_s1, %s450_s19 }
  0x11   : > { %v288_v0 = vld [vmem:[%s262_s22] sm:$0xff]  ;;  %s280_s5 = scalar_lea.vmem %s571_s3, %s450_s19  ;;  %s287_s8 = scalar_lea.vmem %s572_s4, %s453_s28 }
  0x12   : > { %v289_v1 = vld [vmem:[%s269_s25] sm:$0xff] }
  0x13   : > { %v290_v3 = vadd.f32 %v289_v1, %v288_v0 }
  0x15   : > { %v292_v4 = vadd.f32 %v291_v2, %v290_v3 }
  0x17   : > { %294 = vst.msk [vmem:[%s280_s5] sm:$0xff] %vm293_vm0, %v292_v4  ;;  %v295_v5 = vpack.c.bf16 %v292_v4, %v292_v4 }
  0x19   : > { %297 = vst.msk [vmem:[%s287_s8] sm:$0xf] %vm296_vm1, %v295_v5 }
  0x1a PF: > { %s15_s17 = sadd.s32 1, %s502_s17   ;;  %s573_s15 = smov %s498_s16 }
  0x1b   : > { %p12_p5 = scmp.ge.s32.totalorder %s15_s17, 4   ;;  %s574_s16 = smov %s576_s18 }
  0x1d   :  { %14 = sbr.rel (!%p12_p5) target bundleno = 2 (0x2), region = 80 }

// kernel: bert_encoder_forward.9
= control target key start
LH: loop header
LB: loop body
LE: loop exit
PB: predicated region body
PF: predicated region fallthrough
CT: control target
= control target key end

     0   :  { %s869_s0 = inlined_call_operand.vmem [shape: s32[2], index: 0, kind: input, shape index: {}]   ;;  %s870_s1 = inlined_call_operand.vmem [shape: bf16[16,32], index: 1, kind: input, shape index: {}]   ;;  %s871_s2 = inlined_call_operand.vmem [shape: bf16[16,32], index: 2, kind: input, shape index: {}]   ;;  %s872_s3 = inlined_call_operand.vmem [shape: bf16[16,32], index: 3, kind: input, shape index: {}]   ;;  %s873_s4 = inlined_call_operand.vmem [shape: bf16[16,32], index: 4, kind: output, shape index: {}]  }
   0x1   :  { %s9_s17 = sshll.u32 %s869_s0, 4  ;;  %s10_s17 = int_to_ptr.vmem [resolvable:$true] %s9_s17 }
   0x2   :  { %s725_s18 = scalar_lea.vmem %s10_s17, 16  ;;  %p730_p1 = scmp.lt.s32.totalorder %s10_s17, %s10_s17 }
   0x3   :  { %p726_p0 = scmp.ne.s32.totalorder %s10_s17, %s725_s18  ;;  %p731_p2 = scmp.lt.s32.totalorder %s725_s18, %s725_s18 }
   0x5   :  { %p732_p3 = por %p731_p2, %p730_p1 }
   0x7   :  { %p733_p4 = pnand %p732_p3, %p726_p0 }
   0x9   :  { %736 = shalt.err (!%p733_p4)  }
   0xa   :  { %s763_s19 = smov [#allocation3]  }
   0xb   :  { %12 = dma.vmem_to_smem %s10_s17, 16, %s763_s19, [#allocation2] }
   0xc   :  { %749 = dma.done.wait [#allocation2], 16 }
   0xd   :  { %750 = vsyncadd [#allocation2], 4294967280 }
   0xe   :  { %14 = sfence }
   0xf   :  { %s796_s20 = smov 0   ;;  %s798_s21 = smov 0  }
  0x10   :  { %s800_s22 = smov 0  }
  0x11 LB: > { %s39_s0 = sadd.s32 1, %s757_s21  ;;  %p639_p5 = scmp.ge.s32.totalorder %s761_s22, 1  ;;  %s761_s22 = sphi %s800_s22, %s20_s22   ;;  %s757_s21 = sphi %s798_s21, %s877_s21   ;;  %s753_s20 = sphi %s796_s20, %s876_s20  }
  0x12   : > { %p41_p6 = scmp.ge.s32.totalorder %s39_s0, 2  ;;  %p203_p7 = scmp.lt.s32.totalorder %s761_s22, 3 }
  0x14   : > { %s879_s0 = smov (%p41_p6, %s39_s0), 0  ;;  %p204_p8 = pnand %p639_p5, %p203_p7 }
  0x15   : > { %p248_p9 = scmp.lt.s32.totalorder (!%p204_p8), %s753_s20, 1  ;;  %v764_v0 = vmov (!%p204_p8), 0.0   ;;  %vm765_vm0 = vmmov (!%p204_p8), 0   ;;  %vm288_vm1 = vcmask (!%p204_p8), 130048   ;;  %s280_s5 = sld [smem:[#allocation3 + %s753_s20]] (!%p204_p8)  ;;  %v281_v4 = vlaneseq (!%p204_p8) }
  0x16   : > { %207 = sbr.rel (%p204_p8) target bundleno = 1439 (0x59f), region = 32  ;;  %661 = vmatprep.subr.bf16.mxu0 (!%p204_p8), %v764_v0  ;;  %663 = vmatprep.mubr.msk.bf16.mxu0 (!%p204_p8), %vm765_vm0, %v764_v0  ;;  %vm336_vm3 = vcmask (!%p204_p8), 64512   ;;  %s766_s6 = smov (!%p204_p8), 112   ;;  %vm352_vm4 = vcmask (!%p204_p8), 1043456   ;;  %vm522_vm5 = vcmask (!%p204_p8), 257024  }
  0x17   : > { %667 = vmatprep.subr.bf16.mxu1 (!%p204_p8), %v764_v0  ;;  %669 = vmatprep.mubr.msk.bf16.mxu1 (!%p204_p8), %vm765_vm0, %v764_v0  ;;  %v282_v5 = vand.u32 (!%p204_p8), 127, %v281_v4  ;;  %s767_s10 = smov (!%p204_p8), 16  }
  0x1b   : > { %v283_v6 = vstv (!%p204_p8), %s280_s5 }
  0x1c   : > { %vm829_vm2 = vcmp.lt.s32.totalorder (!%p204_p8), %v282_v5, %v283_v6 }
  0x1d   : > { %s249_s23 = scalar_select %p248_p9, %s753_s20, 1 }
  0x1f   : > { %s816_s24 = sshll.u32 %s249_s23, 2 }
  0x20   : > { %s262_s27 = scalar_lea.vmem %s871_s2, %s816_s24  ;;  %s254_s30 = scalar_lea.vmem %s870_s1, %s816_s24 }
  0x21   : > { %v286_v1 = vld [vmem:[%s262_s27] sm:$0xf]  ;;  %s269_s9 = scalar_lea.vmem %s872_s3, %s816_s24  ;;  %s277_s13 = scalar_lea.vmem %s873_s4, %s816_s24 }
  0x22   : > { %v293_v2 = vsel %vm288_vm1, %v286_v1, 0  ;;  %v285_v3 = vld [vmem:[%s254_s30] sm:$0xf]  ;;  %v647_v14 = vcombine.low %v286_v1, %v286_v1 }
  0x23   : > { %662 = vmatpush3.bf16.xpose.msra.mxu0 %v293_v2  ;;  %v646_v15 = vcombine.low %v285_v3, %v285_v3  ;;  %v287_v21 = vld [vmem:[%s269_s9] sm:$0xf] }
  0x24   : > { %679 = vmatprep.subr.bf16.mxu0 %v764_v0  ;;  %404 = vrot.lane.b32.xlu1 %v647_v14, %s766_s6  ;;  %v354_v22 = vsel %vm352_vm4, %v287_v21, 0  ;;  %v649_v40 = vcombine.low %v287_v21, %v287_v21 }
  0x25   : > { %668 = vmatpush3.bf16.msra.mxu1 %v354_v22 }
  0x26   : > { %673 = vmatprep.subr.bf16.mxu1 %v764_v0 }
  0x28   : > { %399 = vrot.lane.b32.xlu1 %v646_v15, %s766_s6 }
  0x2a   : > { %664 = vmatmul.mubr.msk.bf16.vlgmr.msra.gmra.mrb[0].mxu0 %vm288_vm1, %v285_v3 }
  0x2b   : > { %681 = vmatprep.mubr.msk.bf16.mxu0 %vm765_vm0, %v764_v0 }
  0x96   : > { %v405_v25 = vpop.permute.xlu1 %404 }
  0x97   : > { %v410_v27 = vsel %vm288_vm1, %v405_v25, 0 }
  0x9a   : > { %v400_v29 = vpop.permute.xlu1 %399 }
  0xfd   : > { %v329_v8 = vpop.f32.mrb[0].mxu0 }
  0xfe   : > { %v335_v9 = vsel %vm829_vm2, %v329_v8, -1000000.0  ;;  %v665_v10 = vpop.f32.mrb[1].mxu0 }
  0xff   : > { %v332_v11 = vpop.f32.mrb[2].mxu0  ;;  %v337_v12 = vsel %vm336_vm3, %v335_v9, -inf }
 0x100   : > { %338 = vmax.xlane.f32.xlu0 %v337_v12  ;;  %v666_v13 = vpop.f32.mrb[3].mxu0 }
 0x18d   : > { %v339_v16 = vpop.xlane.xlu0 %338 }
 0x18e   : > { %v340_v17 = vsub.f32 %v335_v9, %v339_v16 }
 0x190   : > { %v341_v18 = vmul.f32 1.442695, %v340_v17 }
 0x192   : > { %717 = vpow2.f32 %v341_v18 }
 0x19c   : > { %v718_v19 = vpop.eup %717 }
 0x19d   : > { %v343_v20 = vsel %vm336_vm3, %v718_v19, 0.0 }
 0x19e   : > { %344 = vadd.xlane.f32.xlu0 %v343_v20 }
 0x22b   : > { %v345_v23 = vpop.xlane.xlu0 %344 }
 0x22c   : > { %719 = vrcp.f32 %v345_v23 }
 0x236   : > { %v720_v24 = vpop.eup %719 }
 0x237   : > { %v347_v26 = vmul.f32 %v720_v24, %v718_v19 }
 0x239   : > { %v348_v28 = vpack.c.bf16 %v347_v26, %v347_v26 }
 0x23b   : > { %670 = vmatmul.mubr.msk.bf16.vlgmr.msra.gmra.mrb[0].mxu1 %vm336_vm3, %v348_v28 }
 0x23c   : > { %674 = vmatpush3.bf16.xpose.msra.mxu1 %v410_v27  ;;  %675 = vmatprep.mubr.msk.bf16.mxu1 %vm765_vm0, %v764_v0 }
 0x243   : > { %676 = vmatmul.mubr.msk.bf16.vlgmr.msra.gmra.mrb[4].mxu1 %vm288_vm1, %v400_v29 }
 0x30e   : > { %v390_v30 = vpop.f32.mrb[0].mxu1 }
 0x30f   : > { %v671_v31 = vpop.f32.mrb[1].mxu1 }
 0x310   : > { %v393_v32 = vpop.f32.mrb[2].mxu1 }
 0x311   : > { %v672_v33 = vpop.f32.mrb[3].mxu1 }
 0x316   : > { %v446_v34 = vpop.f32.mrb[4].mxu1 }
 0x317   : > { %v452_v35 = vsel %vm829_vm2, %v446_v34, -1000000.0  ;;  %v677_v36 = vpop.f32.mrb[5].mxu1 }
 0x318   : > { %v449_v37 = vpop.f32.mrb[6].mxu1  ;;  %v453_v38 = vsel %vm336_vm3, %v452_v35, -inf }
 0x319   : > { %454 = vmax.xlane.f32.xlu0 %v453_v38  ;;  %v678_v39 = vpop.f32.mrb[7].mxu1 }
 0x32f   : > { %468 = vrot.lane.b32.xlu0 %v649_v40, %s766_s6 }
 0x3a6   : > { %v455_v41 = vpop.xlane.xlu0 %454 }
 0x3a7   : > { %v456_v42 = vsub.f32 %v452_v35, %v455_v41 }
 0x3a9   : > { %v457_v43 = vmul.f32 1.442695, %v456_v42 }
 0x3aa   : > { %v469_v46 = vpop.permute.xlu0 %468 }
 0x3ab   : > { %721 = vpow2.f32 %v457_v43  ;;  %v474_v47 = vsel %vm352_vm4, %v469_v46, 0 }
 0x3ac   : > { %680 = vmatpush3.bf16.msra.mxu0 %v474_v47 }
 0x3b5   : > { %v722_v44 = vpop.eup %721 }
 0x3b6   : > { %v459_v45 = vsel %vm336_vm3, %v722_v44, 0.0 }
 0x3b7   : > { %460 = vadd.xlane.f32.xlu1 %v459_v45 }
 0x444   : > { %v461_v48 = vpop.xlane.xlu1 %460 }
 0x445   : > { %723 = vrcp.f32 %v461_v48 }
 0x44f   : > { %v724_v49 = vpop.eup %723 }
 0x450   : > { %v463_v50 = vmul.f32 %v724_v49, %v722_v44 }
 0x452   : > { %v464_v51 = vpack.c.bf16 %v463_v50, %v463_v50 }
 0x454   : > { %682 = vmatmul.mubr.msk.bf16.vlgmr.msra.gmra.mrb[4].mxu0 %vm336_vm3, %v464_v51 }
 0x527   : > { %v510_v52 = vpop.f32.mrb[4].mxu0 }
 0x528   : > { %517 = vrot.lane.b32.xlu0 %v510_v52, %s767_s10  ;;  %v683_v53 = vpop.f32.mrb[5].mxu0 }
 0x529   : > { %v513_v54 = vpop.f32.mrb[6].mxu0 }
 0x52a   : > { %v684_v55 = vpop.f32.mrb[7].mxu0 }
 0x59a   : > { %v518_v56 = vpop.permute.xlu0 %517 }
 0x59b   : > { %v520_v57 = vsel %vm288_vm1, %v390_v30, %v518_v56 }
 0x59c   : > { %v521_v58 = vpack.c.bf16 %v520_v57, %v520_v57 }
 0x59e   : > { %523 = vst.msk [vmem:[%s277_s13] sm:$0xf] %vm522_vm5, %v521_v58 }
 0x59f PF: > { %s20_s22 = sadd.s32 1, %s761_s22   ;;  %s876_s20 = smov %s757_s21 }
 0x5a0   : > { %p17_p10 = scmp.ge.s32.totalorder %s20_s22, 4   ;;  %s877_s21 = smov %s879_s0 }
 0x5a2   :  { %19 = sbr.rel (!%p17_p10) target bundleno = 17 (0x11), region = 68 }

// kernel: bert_encoder_forward.10
= control target key start
LH: loop header
LB: loop body
LE: loop exit
PB: predicated region body
PF: predicated region fallthrough
CT: control target
= control target key end

     0   :  { %s1186_s25 = smov 0   ;;  %s1188_s26 = smov 0   ;;  %s1304_s0 = inlined_call_operand.vmem [shape: bf16[16,32], index: 0, kind: input, shape index: {}]   ;;  %s1305_s1 = inlined_call_operand.vmem [shape: f32[16,32], index: 1, kind: input, shape index: {}]   ;;  %s1306_s2 = inlined_call_operand.vmem [shape: bf16[32,32], index: 2, kind: input, shape index: {}]   ;;  %s1307_s3 = inlined_call_operand.vmem [shape: f32[1,32], index: 3, kind: input, shape index: {}]   ;;  %s1308_s4 = inlined_call_operand.vmem [shape: f32[1,32], index: 4, kind: input, shape index: {}]   ;;  %s1309_s5 = inlined_call_operand.vmem [shape: f32[1,32], index: 5, kind: input, shape index: {}]   ;;  %s1310_s6 = inlined_call_operand.vmem [shape: bf16[32,64], index: 6, kind: input, shape index: {}]   ;;  %s1311_s7 = inlined_call_operand.vmem [shape: f32[1,64], index: 7, kind: input, shape index: {}]   ;;  %s1312_s8 = inlined_call_operand.vmem [shape: bf16[64,32], index: 8, kind: input, shape index: {}]   ;;  %s1313_s9 = inlined_call_operand.vmem [shape: f32[1,32], index: 9, kind: input, shape index: {}]   ;;  %s1314_s10 = inlined_call_operand.vmem [shape: f32[1,32], index: 10, kind: input, shape index: {}]   ;;  %s1315_s11 = inlined_call_operand.vmem [shape: f32[1,32], index: 11, kind: input, shape index: {}]   ;;  %s1316_s12 = inlined_call_operand.vmem [shape: f32[16,32], index: 12, kind: output, shape index: {0}]   ;;  %s1317_s13 = inlined_call_operand.vmem [shape: bf16[16,32], index: 13, kind: output, shape index: {1}]  }
   0x1   :  { %s1190_s27 = smov 0  }
   0x2 LB: > { %s36_s28 = sadd.s32 1, %s1108_s26  ;;  %p988_p0 = scmp.ge.s32.totalorder %s1112_s27, 1  ;;  %s1112_s27 = sphi %s1190_s27, %s24_s27   ;;  %s1108_s26 = sphi %s1188_s26, %s1319_s26   ;;  %s1104_s25 = sphi %s1186_s25, %s1318_s25  }
   0x3   : > { %p38_p1 = scmp.ge.s32.totalorder %s36_s28, 2  ;;  %p438_p2 = scmp.lt.s32.totalorder %s1112_s27, 3 }
   0x5   : > { %s1321_s28 = smov (%p38_p1, %s36_s28), 0  ;;  %p439_p3 = pnand %p988_p0, %p438_p2 }
   0x6   : > { %v1078_v0 = vld [vmem:[%s1306_s2] sm:$0xff] (!%p439_p3)   ;;  %v1114_v1 = vmov (!%p439_p3), 0.0   ;;  %v1079_v2 = vld [vmem:[%s1306_s2 + $0x8] sm:$0xff] (!%p439_p3)   ;;  %vm1115_vm0 = vmmov (!%p439_p3), 0   ;;  %p500_p4 = scmp.lt.s32.totalorder (!%p439_p3), %s1104_s25, 1  ;;  %vm558_vm1 = vcmask (!%p439_p3), 261120  }
   0x7   : > { %442 = sbr.rel (%p439_p3) target bundleno = 1317 (0x525), region = 68  ;;  %1024 = vmatprep.subr.bf16.mxu1 (!%p439_p3), %v1114_v1  ;;  %1040 = vmatprep.subr.bf16.mxu0 (!%p439_p3), %v1114_v1  ;;  %635 = vst.msk [vmem:[#allocation3] sm:$0xff] (!%p439_p3), %vm558_vm1, %v1114_v1  ;;  %v993_v4 = vld [vmem:[%s1307_s3] ss:$0 sm:$0xff] (!%p439_p3)  ;;  %v1081_v19 = vld [vmem:[%s1310_s6 + $0x8] sm:$0xff] (!%p439_p3)   ;;  %v1084_v33 = vld [vmem:[%s1312_s8 + $0x10] sm:$0xff] (!%p439_p3)  }
   0x8   : > { %1025 = vmatpush3.bf16.msra.mxu1 (!%p439_p3), %v1078_v0  ;;  %1028 = vmatprep.mubr.msk.bf16.mxu1 (!%p439_p3), %vm1115_vm0, %v1114_v1  ;;  %v1080_v18 = vld [vmem:[%s1310_s6] sm:$0xff] (!%p439_p3)   ;;  %v1083_v21 = vld [vmem:[%s1312_s8 + $0x8] sm:$0xff] (!%p439_p3)   ;;  %v1085_v34 = vld [vmem:[%s1312_s8 + $0x18] sm:$0xff] (!%p439_p3)   ;;  %vm740_vm2 = vcmask (!%p439_p3), 523264   ;;  %vm832_vm3 = vcmask (!%p439_p3), 257024  }
   0x9   : > { %1026 = vmatprep.subr.bf16.mxu1 (!%p439_p3), %v1114_v1  ;;  %1048 = vmatprep.mubr.msk.bf16.mxu0 (!%p439_p3), %vm1115_vm0, %v1114_v1  ;;  %v1082_v20 = vld [vmem:[%s1312_s8] sm:$0xff] (!%p439_p3)  }
   0xa   : > { %1041 = vmatpush3.bf16.msra.mxu0 (!%p439_p3), %v1082_v20  ;;  %v997_v26 = vld [vmem:[%s1308_s4] ss:$0 sm:$0xff] (!%p439_p3) }
   0xb   : > { %1042 = vmatprep.subr.bf16.mxu0 (!%p439_p3), %v1114_v1  ;;  %v998_v28 = vld [vmem:[%s1309_s5] ss:$0 sm:$0xff] (!%p439_p3) }
   0xc   : > { %1027 = vmatpush3.bf16.msra.mxu1 (!%p439_p3), %v1079_v2  ;;  %v999_v35 = vld [vmem:[%s1311_s7] ss:$0 sm:$0xff] (!%p439_p3) }
   0xd   : > { %1032 = vmatprep.subr.bf16.mxu1 (!%p439_p3), %v1114_v1  ;;  %v1008_v50 = vld [vmem:[%s1313_s9] ss:$0 sm:$0xff] (!%p439_p3) }
   0xe   : > { %s1323_s25 = smov (!%p500_p4, %s1104_s25), 1  ;;  %1043 = vmatpush3.bf16.msra.mxu0 %v1083_v21  ;;  %v706_v43 = vld [vmem:[#allocation3] sm:$0xff]  ;;  %v1009_v63 = vld [vmem:[%s1314_s10] ss:$0 sm:$0xff] }
   0xf   : > { %s989_s16 = sshll.u32 %s1323_s25, 2  ;;  %s990_s20 = sshll.u32 %s1323_s25, 3  ;;  %1044 = vmatprep.subr.bf16.mxu0 %v1114_v1 }
  0x10   : > { %s503_s19 = scalar_lea.vmem %s1304_s0, %s989_s16  ;;  %s507_s23 = scalar_lea.vmem %s1305_s1, %s990_s20 }
  0x11   : > { %v534_v3 = vld [vmem:[%s503_s19] sm:$0xf]  ;;  %s524_s18 = scalar_lea.vmem %s1316_s12, %s990_s20  ;;  %s528_s22 = scalar_lea.vmem %s1317_s13, %s989_s16 }
  0x12   : > { %1029 = vmatmul.mubr.msk.bf16.vlgmr.msra.gmra.mrb[0].mxu1 %vm558_vm1, %v534_v3  ;;  %v602_v6 = vld [vmem:[%s507_s23] sm:$0xff]  ;;  %1045 = vmatpush3.bf16.msra.mxu0 %v1084_v33 }
  0x13   : > { %1036 = vmatprep.mubr.msk.bf16.mxu1 %vm1115_vm0, %v1114_v1  ;;  %1033 = vmatpush3.bf16.msra.mxu1 %v1080_v18 }
  0x14   : > { %1034 = vmatprep.subr.bf16.mxu1 %v1114_v1  ;;  %1046 = vmatprep.subr.bf16.mxu0 %v1114_v1  ;;  %v1010_v1 = vld [vmem:[%s1315_s11] ss:$0 sm:$0xff] }
  0x16   : > { %1047 = vmatpush3.bf16.msra.mxu0 %v1085_v34 }
  0x17   : > { %1035 = vmatpush3.bf16.msra.mxu1 %v1081_v19 }
  0xe5   : > { %v596_v5 = vpop.f32.mrb[0].mxu1 }
  0xe6   : > { %v597_v7 = vadd.f32 %v993_v4, %v596_v5  ;;  %v1030_v8 = vpop.f32.mrb[1].mxu1 }
  0xe7   : > { %v599_v9 = vpop.f32.mrb[2].mxu1 }
  0xe8   : > { %v1031_v10 = vpop.f32.mrb[3].mxu1  ;;  %v603_v11 = vadd.f32 %v602_v6, %v597_v7 }
  0xea   : > { %v606_v12 = vsel %vm558_vm1, %v603_v11, 0.0 }
  0xeb   : > { %607 = vadd.xlane.f32.xlu0 %v606_v12 }
 0x178   : > { %v608_v13 = vpop.xlane.xlu0 %607 }
 0x179   : > { %v610_v14 = vmul.f32 0.03125, %v608_v13 }
 0x17b   : > { %v611_v15 = vsub.f32 %v603_v11, %v610_v14 }
 0x17d   : > { %v612_v16 = vmul.f32 %v611_v15, %v611_v15 }
 0x17f   : > { %v613_v17 = vsel %vm558_vm1, %v612_v16, 0.0 }
 0x180   : > { %614 = vadd.xlane.f32.xlu0 %v613_v17 }
 0x20d   : > { %v615_v22 = vpop.xlane.xlu0 %614 }
 0x20e   : > { %v616_v23 = vmul.f32 0.03125, %v615_v22 }
 0x210   : > { %v617_v24 = vadd.f32 1e-05, %v616_v23 }
 0x212   : > { %1086 = vrsqrt.f32 %v617_v24 }
 0x21c   : > { %v1087_v25 = vpop.eup %1086 }
 0x21d   : > { %v619_v27 = vmul.f32 %v1087_v25, %v611_v15 }
 0x21f   : > { %v626_v29 = vmul.f32 %v997_v26, %v619_v27 }
 0x221   : > { %v633_v30 = vadd.f32 %v998_v28, %v626_v29 }
 0x223   : > { %634 = vst.msk [vmem:[#allocation2] sm:$0xff] %vm558_vm1, %v633_v30 }
 0x22a   : > { %v636_v31 = vld [vmem:[#allocation2] sm:$0xff] }
 0x22b   : > { %v637_v32 = vpack.c.bf16 %v636_v31, %v636_v31 }
 0x22d   : > { %1037 = vmatmul.mubr.msk.bf16.vlgmr.msra.gmra.mrb[4].mxu1 %vm558_vm1, %v637_v32 }
 0x300   : > { %v699_v36 = vpop.f32.mrb[4].mxu1 }
 0x301   : > { %v700_v37 = vadd.f32 %v999_v35, %v699_v36  ;;  %v1038_v38 = vpop.f32.mrb[5].mxu1 }
 0x302   : > { %v702_v39 = vpop.f32.mrb[6].mxu1 }
 0x303   : > { %v705_v40 = vmax.f32 %v700_v37, 0.0  ;;  %v1039_v41 = vpop.f32.mrb[7].mxu1 }
 0x305   : > { %v707_v42 = vpack.c.bf16 %v705_v40, %v705_v40 }
 0x307   : > { %1049 = vmatmul.mubr.msk.bf16.vlgmr.msra.gmra.mrb[0].mxu0 %vm740_vm2, %v707_v42 }
 0x3da   : > { %v778_v44 = vpop.f32.mrb[0].mxu0 }
 0x3db   : > { %v784_v45 = vadd.f32 %v778_v44, %v706_v43  ;;  %v1050_v46 = vpop.f32.mrb[1].mxu0 }
 0x3dc   : > { %v781_v47 = vpop.f32.mrb[2].mxu0 }
 0x3dd   : > { %785 = vst.msk [vmem:[#allocation3] sm:$0xff] %vm558_vm1, %v784_v45  ;;  %v1051_v48 = vpop.f32.mrb[3].mxu0 }
 0x3e4   : > { %v790_v49 = vld [vmem:[#allocation3] sm:$0xff] }
 0x3e5   : > { %v791_v51 = vadd.f32 %v790_v49, %v636_v31 }
 0x3e7   : > { %v799_v52 = vadd.f32 %v1008_v50, %v791_v51 }
 0x3e9   : > { %v802_v53 = vsel %vm558_vm1, %v799_v52, 0.0 }
 0x3ea   : > { %803 = vadd.xlane.f32.xlu1 %v802_v53 }
 0x477   : > { %v804_v54 = vpop.xlane.xlu1 %803 }
 0x478   : > { %v806_v55 = vmul.f32 0.03125, %v804_v54 }
 0x47a   : > { %v807_v56 = vsub.f32 %v799_v52, %v806_v55 }
 0x47c   : > { %v808_v57 = vmul.f32 %v807_v56, %v807_v56 }
 0x47e   : > { %v809_v58 = vsel %vm558_vm1, %v808_v57, 0.0 }
 0x47f   : > { %810 = vadd.xlane.f32.xlu1 %v809_v58 }
 0x50c   : > { %v811_v59 = vpop.xlane.xlu1 %810 }
 0x50d   : > { %v812_v60 = vmul.f32 0.03125, %v811_v59 }
 0x50f   : > { %v813_v61 = vadd.f32 1e-05, %v812_v60 }
 0x511   : > { %1088 = vrsqrt.f32 %v813_v61 }
 0x51b   : > { %v1089_v62 = vpop.eup %1088 }
 0x51c   : > { %v815_v0 = vmul.f32 %v1089_v62, %v807_v56 }
 0x51e   : > { %v822_v2 = vmul.f32 %v1009_v63, %v815_v0 }
 0x520   : > { %v829_v3 = vadd.f32 %v1010_v1, %v822_v2 }
 0x522   : > { %830 = vst.msk [vmem:[%s524_s18] sm:$0xff] %vm558_vm1, %v829_v3  ;;  %v831_v4 = vpack.c.bf16 %v829_v3, %v829_v3 }
 0x524   : > { %833 = vst.msk [vmem:[%s528_s22] sm:$0xf] %vm832_vm3, %v831_v4 }
 0x525 PF: > { %s24_s27 = sadd.s32 1, %s1112_s27   ;;  %s1318_s25 = smov %s1108_s26 }
 0x526   : > { %p21_p5 = scmp.ge.s32.totalorder %s24_s27, 4   ;;  %s1319_s26 = smov %s1321_s28 }
 0x528   :  { %23 = sbr.rel (!%p21_p5) target bundleno = 2 (0x2), region = 130 }

// kernel: bert_encoder_forward.13
= control target key start
LH: loop header
LB: loop body
LE: loop exit
PB: predicated region body
PF: predicated region fallthrough
CT: control target
= control target key end

     0   :  { %s1576_s0 = inlined_call_operand.vmem [shape: bf16[16,32], index: 0, kind: input, shape index: {}]   ;;  %s1577_s1 = inlined_call_operand.vmem [shape: f32[16,32], index: 1, kind: input, shape index: {}]   ;;  %s1578_s2 = inlined_call_operand.vmem [shape: bf16[32,32], index: 2, kind: input, shape index: {}]   ;;  %s1579_s3 = inlined_call_operand.vmem [shape: f32[1,32], index: 3, kind: input, shape index: {}]   ;;  %s1580_s4 = inlined_call_operand.vmem [shape: f32[1,32], index: 4, kind: input, shape index: {}]   ;;  %s1581_s5 = inlined_call_operand.vmem [shape: f32[1,32], index: 5, kind: input, shape index: {}]   ;;  %s1582_s6 = inlined_call_operand.vmem [shape: bf16[32,64], index: 6, kind: input, shape index: {}]   ;;  %s1583_s7 = inlined_call_operand.vmem [shape: f32[1,64], index: 7, kind: input, shape index: {}]   ;;  %s1584_s8 = inlined_call_operand.vmem [shape: bf16[64,32], index: 8, kind: input, shape index: {}]   ;;  %s1585_s9 = inlined_call_operand.vmem [shape: f32[1,32], index: 9, kind: input, shape index: {}]   ;;  %s1586_s10 = inlined_call_operand.vmem [shape: f32[1,32], index: 10, kind: input, shape index: {}]   ;;  %s1587_s11 = inlined_call_operand.vmem [shape: f32[1,32], index: 11, kind: input, shape index: {}]   ;;  %s1588_s12 = inlined_call_operand.hbm [shape: f32[16,32], index: 12, kind: output, shape index: {0}]   ;;  %s1589_s13 = inlined_call_operand.hbm [shape: bf16[16,32], index: 13, kind: output, shape index: {1}]  }
   0x1   :  { %1592 = sst [smem:[#allocation13_spill]] %s1576_s0 }
   0x2   :  { %1593 = sst [smem:[#allocation14_spill]] %s1577_s1 }
   0x3   :  { %1594 = sst [smem:[#allocation15_spill]] %s1578_s2 }
   0x4   :  { %1595 = sst [smem:[#allocation16_spill]] %s1579_s3 }
   0x5   :  { %19 = vsyncpa [#allocation5], 0 }
   0x6   :  { %21 = vsyncpa [#allocation5 + $0x1], 0 }
   0x7   :  { %22 = vsyncpa [#allocation7], 0 }
   0x8   :  { %24 = vsyncpa [#allocation7 + $0x1], 0  ;;  %s1354_s25 = smov 0   ;;  %s1356_s26 = smov 0  }
   0x9   :  { %s1358_s27 = smov 0   ;;  %s1360_s28 = smov 0  }
   0xa   :  { %s1362_s29 = smov 0   ;;  %s1364_s30 = smov 0  }
   0xb LB: > { %1596 = sst [smem:[#allocation10_spill]] %s1274_s29  ;;  %s1019_s14 = sadd.s32 4294967295, %s1278_s30   ;;  %s1278_s30 = sphi %s1364_s30, %s30_s30   ;;  %s1274_s29 = sphi %s1362_s29, %s1607_s29   ;;  %s1270_s28 = sphi %s1360_s28, %s1606_s28   ;;  %s1266_s27 = sphi %s1358_s27, %s1610_s27   ;;  %s1262_s26 = sphi %s1356_s26, %s1609_s26   ;;  %s1258_s25 = sphi %s1354_s25, %s1608_s25  }
   0xc   : > { %s1020_s15 = sadd.s32 4294967294, %s1278_s30   ;;  %s42_s16 = sadd.s32 1, %s1274_s29 }
   0xd   : > { %s326_s17 = sadd.s32 1, %s1266_s27  ;;  %p44_p0 = scmp.ge.s32.totalorder %s42_s16, 2 }
   0xe   : > { %p336_p1 = scmp.ne.s32.totalorder %s1266_s27, %s1262_s26  ;;  %p337_p2 = scmp.eq.s32.totalorder %s1019_s14, 1 }
   0xf   : > { %p342_p3 = scmp.ne.s32.totalorder %s1262_s26, %s1258_s25  ;;  %s1612_s16 = smov (%p44_p0, %s42_s16), 0 }
  0x10   : > { %1597 = sst [smem:[#allocation11_spill]] %s1612_s16  ;;  %p1394_p4 = por %p337_p2, %p336_p1 }
  0x11   : > { %p343_p5 = scmp.eq.s32.totalorder %s1020_s15, 1  ;;  %s323_s19 = ssub.s32 %s1274_s29, %s1612_s16 }
  0x12   : > { %p1026_p6 = scmp.ge.s32.totalorder %s1278_s30, 1  ;;  %p324_p7 = scmp.eq.s32.totalorder %s323_s19, 0 }
  0x13   : > { %p1401_p8 = por %p343_p5, %p342_p3  ;;  %p444_p9 = scmp.lt.s32.totalorder %s1278_s30, 3 }
  0x14   : > { %s1407_s21 = scalar_select %p324_p7, %s1266_s27, %s326_s17  }
  0x15   : > { %p445_p10 = pnand %p1026_p6, %p444_p9 }
  0x16   : > { %1600 = sst [smem:[#allocation12_spill]] %s1407_s21  ;;  %s1601_s2 = sld [smem:[#allocation15_spill]] (!%p445_p10)  ;;  %v1280_v1 = vmov (!%p445_p10), 0.0   ;;  %vm1281_vm0 = vmmov (!%p445_p10), 0   ;;  %vm558_vm1 = vcmask (!%p445_p10), 261120   ;;  %v1158_v18 = vld [vmem:[%s1582_s6] sm:$0xff] (!%p445_p10)  }
  0x17   : > { %448 = sbr.rel (%p445_p10) target bundleno = 1369 (0x559), region = 68  ;;  %1066 = vmatprep.subr.bf16.mxu1 (!%p445_p10), %v1280_v1  ;;  %1082 = vmatprep.subr.bf16.mxu0 (!%p445_p10), %v1280_v1  ;;  %p508_p11 = scmp.lt.s32.totalorder (!%p445_p10), %s1270_s28, 1  ;;  %635 = vst.msk [vmem:[#allocation3] sm:$0xff] (!%p445_p10), %vm558_vm1, %v1280_v1  ;;  %v1159_v19 = vld [vmem:[%s1582_s6 + $0x8] sm:$0xff] (!%p445_p10)   ;;  %v1160_v20 = vld [vmem:[%s1584_s8] sm:$0xff] (!%p445_p10)   ;;  %v1162_v33 = vld [vmem:[%s1584_s8 + $0x10] sm:$0xff] (!%p445_p10)  }
  0x18   : > { %1070 = vmatprep.mubr.msk.bf16.mxu1 (!%p445_p10), %vm1281_vm0, %v1280_v1  ;;  %1090 = vmatprep.mubr.msk.bf16.mxu0 (!%p445_p10), %vm1281_vm0, %v1280_v1  ;;  %s1602_s0 = sld [smem:[#allocation13_spill]] (!%p445_p10)  ;;  %s1603_s1 = sld [smem:[#allocation14_spill]] (!%p445_p10)  ;;  %v1161_v21 = vld [vmem:[%s1584_s8 + $0x8] sm:$0xff] (!%p445_p10)   ;;  %v1035_v26 = vld [vmem:[%s1580_s4] ss:$0 sm:$0xff] (!%p445_p10)  ;;  %v1163_v34 = vld [vmem:[%s1584_s8 + $0x18] sm:$0xff] (!%p445_p10)  }
  0x19   : > { %s1604_s3 = sld [smem:[#allocation16_spill]] (!%p445_p10)  ;;  %1083 = vmatpush3.bf16.msra.mxu0 (!%p445_p10), %v1160_v20  ;;  %v1036_v28 = vld [vmem:[%s1581_s5] ss:$0 sm:$0xff] (!%p445_p10)  ;;  %vm740_vm2 = vcmask (!%p445_p10), 523264   ;;  %vm832_vm3 = vcmask (!%p445_p10), 257024  }
  0x1a   : > { %1084 = vmatprep.subr.bf16.mxu0 (!%p445_p10), %v1280_v1  ;;  %v1037_v35 = vld [vmem:[%s1583_s7] ss:$0 sm:$0xff] (!%p445_p10) }
  0x1b   : > { %v1046_v50 = vld [vmem:[%s1585_s9] ss:$0 sm:$0xff] (!%p445_p10) }
  0x1c   : > { %v1156_v0 = vld [vmem:[%s1601_s2] sm:$0xff] (!%p445_p10)   ;;  %v1157_v2 = vld [vmem:[%s1601_s2 + $0x8] sm:$0xff] (!%p445_p10)  }
  0x1d   : > { %1067 = vmatpush3.bf16.msra.mxu1 (!%p445_p10), %v1156_v0  ;;  %1085 = vmatpush3.bf16.msra.mxu0 (!%p445_p10), %v1161_v21  ;;  %v1047_v63 = vld [vmem:[%s1586_s10] ss:$0 sm:$0xff] (!%p445_p10) }
  0x1e   : > { %1068 = vmatprep.subr.bf16.mxu1 %v1280_v1  ;;  %s509_s15 = scalar_select %p508_p11, %s1270_s28, 1  ;;  %1086 = vmatprep.subr.bf16.mxu0 %v1280_v1  ;;  %v706_v43 = vld [vmem:[#allocation3] sm:$0xff] }
  0x1f   : > { %v1031_v4 = vld [vmem:[%s1604_s3] ss:$0 sm:$0xff] }
  0x20   : > { %s1029_s17 = sshll.u32 %s509_s15, 2  ;;  %s1030_s24 = sshll.u32 %s509_s15, 3 }
  0x21   : > { %1069 = vmatpush3.bf16.msra.mxu1 %v1157_v2  ;;  %s511_s23 = scalar_lea.vmem %s1602_s0, %s1029_s17  ;;  %s515_s16 = scalar_lea.vmem %s1603_s1, %s1030_s24  ;;  %1087 = vmatpush3.bf16.msra.mxu0 %v1162_v33 }
  0x22   : > { %1074 = vmatprep.subr.bf16.mxu1 %v1280_v1  ;;  %v534_v3 = vld [vmem:[%s511_s23] sm:$0xf]  ;;  %1088 = vmatprep.subr.bf16.mxu0 %v1280_v1  ;;  %s1478_s24 = sand.u32 1, %s1262_s26   ;;  %s1051_s17 = sshll.u32 %s1270_s28, 7 }
  0x23   : > { %v602_v6 = vld [vmem:[%s515_s16] sm:$0xff]  ;;  %s1027_s14 = sshll.u32 %s1478_s24, 3  ;;  %s1028_s2 = sshll.u32 %s1478_s24, 2 }
  0x24   : > { %1071 = vmatmul.mubr.msk.bf16.vlgmr.msra.gmra.mrb[0].mxu1 %vm558_vm1, %v534_v3  ;;  %s500_s19 = scalar_lea.vmem [#allocation4], %s1027_s14  ;;  %s1052_s23 = sshll.u32 %s1270_s28, 6 }
  0x25   : > { %1078 = vmatprep.mubr.msk.bf16.mxu1 %vm1281_vm0, %v1280_v1  ;;  %1075 = vmatpush3.bf16.msra.mxu1 %v1158_v18  ;;  %s853_s22 = sshll.u32 %s500_s19, 4  ;;  %s1490_s0 = scalar_lea.vmem [#allocation6], %s1028_s2  ;;  %s1498_s22 = int_to_ptr.vmem [resolvable:$true] %s853_s22 }
  0x26   : > { %1076 = vmatprep.subr.bf16.mxu1 %v1280_v1  ;;  %1089 = vmatpush3.bf16.msra.mxu0 %v1163_v34  ;;  %v1048_v1 = vld [vmem:[%s1587_s11] ss:$0 sm:$0xff]  ;;  %s866_s1 = sshll.u32 %s1490_s0, 4  ;;  %s1496_s16 = scalar_lea.hbm %s1588_s12, %s1051_s17  ;;  %s1506_s1 = int_to_ptr.vmem [resolvable:$true] %s866_s1 }
  0x27   : > { %s1504_s2 = scalar_lea.hbm %s1589_s13, %s1052_s23  ;;  %s835_s21 = scalar_lea.sflag [#allocation5], %s1478_s24 }
  0x28   : > { %s1168_s3 = scalar_lea.vmem %s1498_s22, 128  ;;  %s1282_s15 = smov [#allocation4]  }
  0x29   : > { %1077 = vmatpush3.bf16.msra.mxu1 %v1159_v19  ;;  %p1169_p12 = scmp.ne.s32.totalorder %s1498_s22, %s1168_s3  ;;  %s1172_s17 = sshll.u32 %s1282_s15, 4  ;;  %s1173_s17 = int_to_ptr.vmem [resolvable:$false] %s1172_s17 }
  0x2a   : > { %s1174_s29 = scalar_lea.vmem %s1173_s17, 256  ;;  %p1175_p1 = scmp.lt.s32.totalorder %s1498_s22, %s1173_s17 }
  0x2b   : > { %p1170_p13 = pnand %p1169_p12, %p1394_p4  ;;  %p1176_p2 = scmp.lt.s32.totalorder %s1174_s29, %s1168_s3 }
  0x2d   : > { %p1171_p0 = pneg %p1170_p13  ;;  %p1177_p3 = por %p1176_p2, %p1175_p1 }
  0x2f   : > { %p1178_p5 = pnand %p1177_p3, %p1171_p0 }
  0xf7   : > { %v596_v5 = vpop.f32.mrb[0].mxu1 }
  0xf8   : > { %v597_v7 = vadd.f32 %v1031_v4, %v596_v5  ;;  %v1072_v8 = vpop.f32.mrb[1].mxu1 }
  0xf9   : > { %v599_v9 = vpop.f32.mrb[2].mxu1 }
  0xfa   : > { %v1073_v10 = vpop.f32.mrb[3].mxu1  ;;  %v603_v11 = vadd.f32 %v602_v6, %v597_v7 }
  0xfc   : > { %v606_v12 = vsel %vm558_vm1, %v603_v11, 0.0 }
  0xfd   : > { %607 = vadd.xlane.f32.xlu0 %v606_v12 }
 0x18a   : > { %v608_v13 = vpop.xlane.xlu0 %607 }
 0x18b   : > { %v610_v14 = vmul.f32 0.03125, %v608_v13 }
 0x18d   : > { %v611_v15 = vsub.f32 %v603_v11, %v610_v14 }
 0x18f   : > { %v612_v16 = vmul.f32 %v611_v15, %v611_v15 }
 0x191   : > { %v613_v17 = vsel %vm558_vm1, %v612_v16, 0.0 }
 0x192   : > { %614 = vadd.xlane.f32.xlu0 %v613_v17 }
 0x21f   : > { %v615_v22 = vpop.xlane.xlu0 %614 }
 0x220   : > { %v616_v23 = vmul.f32 0.03125, %v615_v22 }
 0x222   : > { %v617_v24 = vadd.f32 1e-05, %v616_v23 }
 0x224   : > { %1164 = vrsqrt.f32 %v617_v24 }
 0x22e   : > { %v1165_v25 = vpop.eup %1164 }
 0x22f   : > { %v619_v27 = vmul.f32 %v1165_v25, %v611_v15 }
 0x231   : > { %v626_v29 = vmul.f32 %v1035_v26, %v619_v27 }
 0x233   : > { %v633_v30 = vadd.f32 %v1036_v28, %v626_v29 }
 0x235   : > { %634 = vst.msk [vmem:[#allocation2] sm:$0xff] %vm558_vm1, %v633_v30 }
 0x23c   : > { %v636_v31 = vld [vmem:[#allocation2] sm:$0xff] }
 0x23d   : > { %v637_v32 = vpack.c.bf16 %v636_v31, %v636_v31 }
 0x23f   : > { %1079 = vmatmul.mubr.msk.bf16.vlgmr.msra.gmra.mrb[4].mxu1 %vm558_vm1, %v637_v32 }
 0x312   : > { %v699_v36 = vpop.f32.mrb[4].mxu1 }
 0x313   : > { %v700_v37 = vadd.f32 %v1037_v35, %v699_v36  ;;  %v1080_v38 = vpop.f32.mrb[5].mxu1 }
 0x314   : > { %v702_v39 = vpop.f32.mrb[6].mxu1 }
 0x315   : > { %v705_v40 = vmax.f32 %v700_v37, 0.0  ;;  %v1081_v41 = vpop.f32.mrb[7].mxu1 }
 0x317   : > { %v707_v42 = vpack.c.bf16 %v705_v40, %v705_v40 }
 0x319   : > { %1091 = vmatmul.mubr.msk.bf16.vlgmr.msra.gmra.mrb[0].mxu0 %vm740_vm2, %v707_v42 }
 0x3ec   : > { %v778_v44 = vpop.f32.mrb[0].mxu0 }
 0x3ed   : > { %v784_v45 = vadd.f32 %v778_v44, %v706_v43  ;;  %v1092_v46 = vpop.f32.mrb[1].mxu0 }
 0x3ee   : > { %v781_v47 = vpop.f32.mrb[2].mxu0 }
 0x3ef   : > { %785 = vst.msk [vmem:[#allocation3] sm:$0xff] %vm558_vm1, %v784_v45  ;;  %v1093_v48 = vpop.f32.mrb[3].mxu0 }
 0x3f6   : > { %v790_v49 = vld [vmem:[#allocation3] sm:$0xff] }
 0x3f7   : > { %v791_v51 = vadd.f32 %v790_v49, %v636_v31 }
 0x3f9   : > { %v799_v52 = vadd.f32 %v1046_v50, %v791_v51 }
 0x3fb   : > { %v802_v53 = vsel %vm558_vm1, %v799_v52, 0.0 }
 0x3fc   : > { %803 = vadd.xlane.f32.xlu1 %v802_v53 }
 0x489   : > { %v804_v54 = vpop.xlane.xlu1 %803 }
 0x48a   : > { %v806_v55 = vmul.f32 0.03125, %v804_v54 }
 0x48c   : > { %v807_v56 = vsub.f32 %v799_v52, %v806_v55 }
 0x48e   : > { %v808_v57 = vmul.f32 %v807_v56, %v807_v56 }
 0x490   : > { %v809_v58 = vsel %vm558_vm1, %v808_v57, 0.0 }
 0x491   : > { %810 = vadd.xlane.f32.xlu1 %v809_v58 }
 0x51e   : > { %v811_v59 = vpop.xlane.xlu1 %810 }
 0x51f   : > { %v812_v60 = vmul.f32 0.03125, %v811_v59 }
 0x521   : > { %v813_v61 = vadd.f32 1e-05, %v812_v60 }
 0x523   : > { %1166 = vrsqrt.f32 %v813_v61 }
 0x52d   : > { %v1167_v62 = vpop.eup %1166 }
 0x52e   : > { %v815_v0 = vmul.f32 %v1167_v62, %v807_v56 }
 0x530   : > { %v822_v2 = vmul.f32 %v1047_v63, %v815_v0 }
 0x532   : > { %v829_v3 = vadd.f32 %v1048_v1, %v822_v2 }
 0x534   : > { %830 = vst.msk [vmem:[%s500_s19] sm:$0xff] %vm558_vm1, %v829_v3  ;;  %v831_v4 = vpack.c.bf16 %v829_v3, %v829_v3 }
 0x535   : > { %1181 = shalt.err (!%p1178_p5)
}
 0x536   : > { %s1182_s19 = scalar_lea.hbm %s1496_s16, 128  ;;  %s1186_s14 = scalar_lea.hbm %s1588_s12, 256 }
 0x537   : > { %p1183_p6 = scmp.ne.s32.totalorder %s1496_s16, %s1182_s19  ;;  %p1187_p10 = scmp.lt.u32.totalorder %s1496_s16, %s1588_s12 }
 0x538   : > { %p1188_p11 = scmp.lt.u32.totalorder %s1186_s14, %s1182_s19  ;;  %p1190_p13 = scmp.lt.u32.totalorder %s1182_s19, %s1496_s16 }
 0x539   : > { %p1184_p7 = pnand %p1183_p6, %p1394_p4 }
 0x53a   : > { %p1189_p12 = por %p1188_p11, %p1187_p10 }
 0x53b   : > { %p1185_p9 = pneg %p1184_p7 }
 0x53c   : > { %p1191_p0 = por %p1190_p13, %p1189_p12 }
 0x53e   : > { %p1192_p1 = pnand %p1191_p0, %p1185_p9 }
 0x540   : > { %1195 = shalt.err (!%p1192_p1)
}
 0x541   : > { %1094 = dma.vmem_to_hbm [thread:$0]  (%p1394_p4), %s1498_s22, 128, %s1496_s16, %s835_s21   ;;  %833 = vst.msk [vmem:[%s1490_s0] sm:$0xf] %vm832_vm3, %v831_v4 }
 0x542   : > { %s840_s3 = scalar_lea.sflag [#allocation7], %s1478_s24  ;;  %s1196_s29 = scalar_lea.vmem %s1506_s1, 64 }
 0x543   : > { %p1197_p2 = scmp.ne.s32.totalorder %s1506_s1, %s1196_s29  ;;  %s1283_s19 = smov [#allocation6]  }
 0x544   : > { %s1200_s23 = sshll.u32 %s1283_s19, 4  ;;  %s1201_s23 = int_to_ptr.vmem [resolvable:$false] %s1200_s23 }
 0x545   : > { %p1198_p3 = pnand %p1197_p2, %p1394_p4  ;;  %s1202_s28 = scalar_lea.vmem %s1201_s23, 128 }
 0x546   : > { %p1203_p6 = scmp.lt.s32.totalorder %s1506_s1, %s1201_s23  ;;  %p1204_p7 = scmp.lt.s32.totalorder %s1202_s28, %s1196_s29 }
 0x547   : > { %p1199_p5 = pneg %p1198_p3 }
 0x548   : > { %p1205_p9 = por %p1204_p7, %p1203_p6 }
 0x54a   : > { %p1206_p10 = pnand %p1205_p9, %p1199_p5 }
 0x54c   : > { %1209 = shalt.err (!%p1206_p10)
}
 0x54d   : > { %s1210_s0 = scalar_lea.hbm %s1504_s2, 64  ;;  %s1214_s16 = scalar_lea.hbm %s1589_s13, 128 }
 0x54e   : > { %p1211_p11 = scmp.ne.s32.totalorder %s1504_s2, %s1210_s0  ;;  %p1215_p0 = scmp.lt.u32.totalorder %s1504_s2, %s1589_s13 }
 0x54f   : > { %p1216_p1 = scmp.lt.u32.totalorder %s1214_s16, %s1210_s0  ;;  %p1218_p3 = scmp.lt.u32.totalorder %s1210_s0, %s1504_s2 }
 0x550   : > { %p1212_p12 = pnand %p1211_p11, %p1394_p4 }
 0x551   : > { %p1217_p2 = por %p1216_p1, %p1215_p0 }
 0x552   : > { %p1213_p13 = pneg %p1212_p12 }
 0x553   : > { %p1219_p5 = por %p1218_p3, %p1217_p2 }
 0x555   : > { %p1220_p6 = pnand %p1219_p5, %p1213_p13 }
 0x557   : > { %1223 = shalt.err (!%p1220_p6)
}
 0x558   : > { %1095 = dma.vmem_to_hbm [thread:$0]  (%p1394_p4), %s1506_s1, 64, %s1504_s2, %s840_s3  }
 0x559 PF: > { %p1105_p7 = scmp.ge.s32.totalorder %s1278_s30, 2  ;;  %s878_s15 = sand.u32 1, %s1258_s25  }
 0x55a   : > { %s879_s17 = scalar_lea.sflag [#allocation5], %s878_s15 }
 0x55b   : > { %p1099_p9 = pnand %p1105_p7, %p1401_p8 }
 0x55d   : > { %1249 = dma.done.wait (!%p1099_p9), %s879_s17, 128  }
 0x55e   : > { %1251 = vsyncadd (!%p1099_p9), %s879_s17, 4294967168  ;;  %s888_s29 = scalar_lea.sflag [#allocation7], %s878_s15 }
 0x55f   : > { %1253 = dma.done.wait (!%p1099_p9), %s888_s29, 64  }
 0x560   : > { %1255 = vsyncadd (!%p1099_p9), %s888_s29, 4294967232  ;;  %s30_s30 = sadd.s32 1, %s1278_s30   ;;  %s1605_s1 = sld [smem:[#allocation12_spill]] }
 0x561   : > { %p27_p10 = scmp.ge.s32.totalorder %s30_s30, 4   ;;  %s1606_s28 = sld [smem:[#allocation10_spill]] }
 0x562   : > { %s1607_s29 = sld [smem:[#allocation11_spill]]  ;;  %s1608_s25 = smov %s1262_s26 }
 0x563   : > { %s1609_s26 = smov %s1266_s27  ;;  %29 = sbr.rel (!%p27_p10) target bundleno = 11 (0xb), region = 140 }
 0x566   : > { %s1610_s27 = smov %s1605_s1 }
 0x56a   :  { %893 = vsyncpa [#allocation5], 1 }
 0x56b   :  { %895 = vsyncpa [#allocation5 + $0x1], 1 }
 0x56c   :  { %896 = vsyncpa [#allocation7], 1 }
 0x56d   :  { %898 = vsyncpa [#allocation7 + $0x1], 1 }

</bundles_post_ra>
